<compile_context>
chip_gen: v5e
topology: v5e:2x2
jax: 0.10.0
libtpu: 0.0.40
codegen_flags: <defaults>
</compile_context>

<pallas_src>
import itertools
from functools import partial

import jax
import jax.numpy as jnp
from jax import lax
from jax.experimental import pallas as pl
from jax.experimental.pallas import tpu as pltpu

# ----------------------------- configuration ------------------------------
DIM = 32          # dim
KEY_DIM = 8       # key_dim
NUM_HEADS = 2     # num_heads
ATTN_RATIO = 2    # attn_ratio
RES = 4           # resolution
B = 2             # batch

N = RES * RES                   # tokens (16)
D = ATTN_RATIO * KEY_DIM        # per-head value dim (16)
DH = D * NUM_HEADS              # 32
NH_KD = KEY_DIM * NUM_HEADS     # 16
QKV_W = 2 * NH_KD + DH          # 64 fused q|k|v output channels
SCALE = KEY_DIM ** (-0.5)
BN_EPS = 1e-5
N_TAPS = 9                      # 3x3 depthwise taps


def _const_spec(shape):
    """BlockSpec for an array that is the same (full) block for every grid step."""
    nd = len(shape)
    return pl.BlockSpec(shape, lambda i, _nd=nd: (0,) * _nd)


def _batch_blocks(batch):
    """Grid steps: 1 on single-TC chips (v5e/v6e) so the whole batch is folded
    into one block; one step per TensorCore on multi-TC chips (v7x)."""
    try:
        kind = jax.devices()[0].device_kind.lower()
    except Exception:
        return 1
    if ("v7" in kind or "7x" in kind) and batch % 2 == 0:
        return 2
    return 1


# --------------------------- fully fused kernel ----------------------------
def fused_kernel(x_ref, wqkv_ref, bqkv_ref, sdw_ref, wdwf_ref, bdw_ref, ab_ref,
                 th1w_ref, th1b_ref, th2w_ref, th2b_ref, wp_ref, bp_ref, o_ref):
    bb = x_ref.shape[0]          # batch elements in this block
    bn = bb * N                  # folded token rows

    # hoist SMEM talking-head scalars once (keeps scalar loads out of the
    # vector stream)
    t1w = [[th1w_ref[g, h] for h in range(NUM_HEADS)] for g in range(NUM_HEADS)]
    t1b = [th1b_ref[g] for g in range(NUM_HEADS)]
    t2w = [[th2w_ref[g, h] for h in range(NUM_HEADS)] for g in range(NUM_HEADS)]
    t2b = [th2b_ref[g] for g in range(NUM_HEADS)]

    # ---- NCHW-native input: lane-concat the batch -> (DIM, bn) --------------
    if bb == 1:
        x_cn = x_ref[0]
    else:
        x_cn = jnp.concatenate([x_ref[b] for b in range(bb)], axis=1)

    # ---- fused q|k|v 1x1 conv (+ folded BN): ONE MXU pass over folded batch,
    # contracting over DIM directly on the channel-major layout (q columns are
    # pre-scaled by key_dim**-0.5 wrapper-side).  Result stays in vregs.
    qkv = lax.dot_general(x_cn, wqkv_ref[...], (((0,), (0,)), ((), ())),
                          preferred_element_type=jnp.float32) + bqkv_ref[...]
    # qkv: (bn, QKV_W) token-major

    v_all = qkv[:, 2 * NH_KD:]                               # (bn, DH)

    # ---- v_local: depthwise 3x3 conv as ONE stacked-tap matmul + VPU reduce -
    taps = jnp.dot(sdw_ref[...], v_all,
                   preferred_element_type=jnp.float32)       # (9*bn, DH)
    prod = taps * wdwf_ref[...]                              # per-channel tap weights
    vloc = bdw_ref[...]
    for t in range(N_TAPS):
        vloc = vloc + prod[t * bn:(t + 1) * bn]              # (bn, DH)

    # ---- attention logits per (batch, head); batch+heads stacked on sublanes
    blocks = []
    for b in range(bb):
        for h in range(NUM_HEADS):
            q_h = qkv[b * N:(b + 1) * N, h * KEY_DIM:(h + 1) * KEY_DIM]
            k_h = qkv[b * N:(b + 1) * N,
                      NH_KD + h * KEY_DIM:NH_KD + (h + 1) * KEY_DIM]
            blocks.append(lax.dot_general(q_h, k_h, (((1,), (1,)), ((), ())),
                                          preferred_element_type=jnp.float32))
    logits = jnp.concatenate(blocks, axis=0) + ab_ref[...]   # (bb*NH*N, N)

    # talking heads as scalar FMAs over aligned sublane slices (no zeros bcast)
    def talking_head(mat, w, bias):
        outs = []
        for b in range(bb):
            hs = [mat[(b * NUM_HEADS + h) * N:(b * NUM_HEADS + h + 1) * N]
                  for h in range(NUM_HEADS)]
            for g in range(NUM_HEADS):
                acc = w[g][0] * hs[0] + bias[g]
                for h in range(1, NUM_HEADS):
                    acc = acc + w[g][h] * hs[h]
                outs.append(acc)
        return jnp.concatenate(outs, axis=0)

    mixed = talking_head(logits, t1w, t1b)

    # ---- softmax over keys, ONCE over the whole stacked tile (EUP recip) ----
    mx = jnp.max(mixed, axis=-1, keepdims=True)
    e = jnp.exp(mixed - mx)
    s = jnp.sum(e, axis=-1, keepdims=True)
    probs = e * pl.reciprocal(s, approx=True)

    mixed2 = talking_head(probs, t2w, t2b)

    # ---- attn @ v; assemble (bn, DH) head-major purely in vregs -------------
    y_rows = []
    for b in range(bb):
        y_heads = []
        for h in range(NUM_HEADS):
            a_bh = mixed2[(b * NUM_HEADS + h) * N:(b * NUM_HEADS + h + 1) * N]
            v_bh = qkv[b * N:(b + 1) * N,
                       2 * NH_KD + h * D:2 * NH_KD + (h + 1) * D]
            y_heads.append(jnp.dot(a_bh, v_bh,
                                   preferred_element_type=jnp.float32))
        y_rows.append(jnp.concatenate(y_heads, axis=1))      # (N, DH)
    y = y_rows[0] if bb == 1 else jnp.concatenate(y_rows, axis=0)  # (bn, DH)

    # ---- + v_local, ReLU, 1x1 proj (+ folded BN); emit channel-major --------
    z = jnp.maximum(y + vloc, 0.0)                           # (bn, DH)
    out_t = lax.dot_general(wp_ref[...], z, (((1,), (1,)), ((), ())),
                            preferred_element_type=jnp.float32) + bp_ref[...]
    for b in range(bb):                                      # out_t: (DIM, bn)
        o_ref[b] = out_t[:, b * N:(b + 1) * N]


def fused_attention4d(x_cn, kp, steps):
    Bb = x_cn.shape[0]
    bb = Bb // steps
    smem = pl.BlockSpec(memory_space=pltpu.MemorySpace.SMEM)
    return pl.pallas_call(
        fused_kernel,
        out_shape=jax.ShapeDtypeStruct((Bb, DIM, N), jnp.float32),
        grid=(steps,),
        in_specs=[
            pl.BlockSpec((bb, DIM, N), lambda i: (i, 0, 0)),      # x (channel-major)
            _const_spec(kp['wqkv'].shape), _const_spec(kp['bqkv'].shape),
            _const_spec(kp['sdw'].shape), _const_spec(kp['wdwf'].shape),
            _const_spec(kp['bdw'].shape), _const_spec(kp['ab'].shape),
            smem, smem, smem, smem,                               # talking-head params
            _const_spec(kp['wp'].shape), _const_spec(kp['bp'].shape),
        ],
        out_specs=pl.BlockSpec((bb, DIM, N), lambda i: (i, 0, 0)),
        compiler_params=pltpu.CompilerParams(
            dimension_semantics=("parallel",)),   # v7x: one batch block per TC
    )(x_cn, kp['wqkv'], kp['bqkv'], kp['sdw'], kp['wdwf'], kp['bdw'], kp['ab'],
      kp['th1_w'], kp['th1_b'], kp['th2_w'], kp['th2_b'], kp['wp'], kp['bp'])


# ------------------------------- full forward ------------------------------
@partial(jax.jit, static_argnames=("steps",))
def attention4d_forward(x_nchw, kp, steps):
    Bb, C, H, W = x_nchw.shape
    # NCHW -> (B, C, N) is a pure reshape: no wrapper transposes remain.
    x_cn = x_nchw.reshape(Bb, C, H * W).astype(jnp.float32)
    out_cn = fused_attention4d(x_cn, kp, steps)
    return out_cn.reshape(Bb, DIM, H, W)


# ---------------------- kernel-side parameter packing ----------------------
def build_dw_tap_matrices():
    """(9, N, N) 0/1 matrices: tap (ky,kx) maps output token n to source token
    n + (ky-1)*RES + (kx-1), zero where the 3x3 window falls off the grid."""
    taps = []
    for ky in range(3):
        for kx in range(3):
            dy, dx = ky - 1, kx - 1
            m = [[0.0] * N for _ in range(N)]
            for n in range(N):
                r, c = divmod(n, RES)
                rr, cc = r + dy, c + dx
                if 0 <= rr < RES and 0 <= cc < RES:
                    m[n][rr * RES + cc] = 1.0
            taps.append(m)
    return jnp.array(taps, dtype=jnp.float32)


def build_dw_tap_stack(bb):
    """Block-diagonal (per batch element) tap matrices stacked to (9*bb*N, bb*N)
    so the whole depthwise conv is one matmul on the batch-folded v."""
    base = build_dw_tap_matrices()                       # (9, N, N)
    eye = jnp.eye(bb, dtype=jnp.float32)
    big = jnp.einsum('bc,tnm->tbncm', eye, base)         # (9, bb, N, bb, N)
    return big.reshape(N_TAPS * bb * N, bb * N)


def prepare_params(p, bb):
    """Pack module params into the layouts the fused kernel consumes.  Done once,
    outside the jitted forward (no per-call weight-prep launches)."""
    bn = bb * N
    kp = dict(
        # fused q|k|v 1x1-conv weight/bias; softmax scale folded into q columns
        wqkv=jnp.concatenate([p['wq'] * SCALE, p['wk'], p['wv']], axis=1),  # (DIM, 64)
        bqkv=jnp.concatenate([p['bq'] * SCALE, p['bk'], p['bv']], axis=1),  # (1, 64)
        # stacked depthwise-conv tap matrices + row-broadcast per-channel weights
        sdw=build_dw_tap_stack(bb),                                          # (9*bn, bn)
        wdwf=jnp.repeat(p['w_dw'].reshape(N_TAPS, DH), bn, axis=0),          # (9*bn, DH)
        bdw=p['b_dw'],                                                       # (1, DH)
        # relative-position bias, stacked to match the (batch, head) row blocks
        ab=jnp.tile(p['ab'].reshape(NUM_HEADS * N, N), (bb, 1)),             # (bb*NH*N, N)
        th1_w=p['th1_w'], th1_b=p['th1_b'],
        th2_w=p['th2_w'], th2_b=p['th2_b'],
        # proj conv in (out, in) orientation + column bias -> channel-major out
        wp=p['wp'].T,                                                        # (DIM, DH)
        bp=p['bp'].reshape(DIM, 1),                                          # (DIM, 1)
    )
    return {k: jnp.asarray(v, jnp.float32) for k, v in kp.items()}


# --------------------------- pure-JAX reference ----------------------------
def reference_forward(x_nchw, p):
    Bb, C, H, W = x_nchw.shape
    x_tok = x_nchw.reshape(Bb, C, H * W).transpose(0, 2, 1)
    qf = x_tok @ p['wq'] + p['bq']
    kf = x_tok @ p['wk'] + p['bk']
    vf = x_tok @ p['wv'] + p['bv']
    q4 = qf.reshape(Bb, N, NUM_HEADS, KEY_DIM).transpose(0, 2, 1, 3)
    k4 = kf.reshape(Bb, N, NUM_HEADS, KEY_DIM).transpose(0, 2, 3, 1)
    v4 = vf.reshape(Bb, N, NUM_HEADS, D).transpose(0, 2, 1, 3)

    v_nchw = vf.transpose(0, 2, 1).reshape(Bb, DH, H, W)
    w_dw_oihw = p['w_dw'].transpose(2, 0, 1)[:, None]   # (C, 1, 3, 3)
    vl = lax.conv_general_dilated(v_nchw, w_dw_oihw, (1, 1), 'SAME',
                                  feature_group_count=DH,
                                  dimension_numbers=('NCHW', 'OIHW', 'NCHW'))
    vl = vl + p['b_dw'][0][None, :, None, None]

    attn = jnp.einsum('bhnk,bhkm->bhnm', q4, k4) * SCALE + p['ab'][None]
    attn = jnp.einsum('gh,bhnm->bgnm', p['th1_w'], attn) + p['th1_b'][None, :, None, None]
    attn = jax.nn.softmax(attn, axis=-1)
    attn = jnp.einsum('gh,bhnm->bgnm', p['th2_w'], attn) + p['th2_b'][None, :, None, None]
    xo = jnp.einsum('bhnm,bhmd->bhnd', attn, v4)

    out_tok = xo.transpose(0, 2, 1, 3).reshape(Bb, N, DH)
    vl_tok = vl.reshape(Bb, DH, H * W).transpose(0, 2, 1)
    y = jnp.maximum(out_tok + vl_tok, 0.0)
    out = y @ p['wp'] + p['bp']
    return out.transpose(0, 2, 1).reshape(Bb, DIM, H, W)


# ---------------------- deterministic parameter setup ----------------------
def _bn_fold(key, ch):
    k1, k2, k3, k4 = jax.random.split(key, 4)
    gamma = 1.0 + 0.1 * jax.random.normal(k1, (ch,))
    beta = 0.1 * jax.random.normal(k2, (ch,))
    mean = 0.1 * jax.random.normal(k3, (ch,))
    var = jax.random.uniform(k4, (ch,), minval=0.5, maxval=1.5)
    s = gamma / jnp.sqrt(var + BN_EPS)
    return s, beta - mean * s


def conv1x1_bn_params(key, in_ch, out_ch):
    kw, kb, kbn = jax.random.split(key, 3)
    w = 0.1 * jax.random.normal(kw, (out_ch, in_ch))
    b = 0.1 * jax.random.normal(kb, (out_ch,))
    s, sh = _bn_fold(kbn, out_ch)
    w_eff = (w * s[:, None]).T                  # (in, out), folded BN
    b_eff = (b * s + sh)[None, :]               # (1, out)
    return w_eff.astype(jnp.float32), b_eff.astype(jnp.float32)


def dwconv_bn_params(key, ch):
    kw, kb, kbn = jax.random.split(key, 3)
    w = 0.1 * jax.random.normal(kw, (ch, 3, 3))
    b = 0.1 * jax.random.normal(kb, (ch,))
    s, sh = _bn_fold(kbn, ch)
    w_eff = (w * s[:, None, None]).transpose(1, 2, 0)   # (3, 3, C)
    b_eff = (b * s + sh)[None, :]                       # (1, C)
    return w_eff.astype(jnp.float32), b_eff.astype(jnp.float32)


def talking_head_params(key, nh):
    kw, kb = jax.random.split(key)
    w = 0.2 * jax.random.normal(kw, (nh, nh))
    b = 0.05 * jax.random.normal(kb, (nh,))
    return w.astype(jnp.float32), b.astype(jnp.float32)


if __name__ == "__main__":
    key = jax.random.PRNGKey(0)
    keys = jax.random.split(key, 10)

    p = {}
    p['wq'], p['bq'] = conv1x1_bn_params(keys[0], DIM, NH_KD)
    p['wk'], p['bk'] = conv1x1_bn_params(keys[1], DIM, NH_KD)
    p['wv'], p['bv'] = conv1x1_bn_params(keys[2], DIM, DH)
    p['w_dw'], p['b_dw'] = dwconv_bn_params(keys[3], DH)
    p['th1_w'], p['th1_b'] = talking_head_params(keys[4], NUM_HEADS)
    p['th2_w'], p['th2_b'] = talking_head_params(keys[5], NUM_HEADS)
    p['wp'], p['bp'] = conv1x1_bn_params(keys[6], DH, DIM)

    # relative-position attention bias table + index matrix (as in __init__);
    # eval-mode precomputed ab (the training-mode per-forward gather is not covered)
    points = list(itertools.product(range(RES), range(RES)))
    attention_offsets = {}
    idxs = []
    for p1 in points:
        for p2 in points:
            off = (abs(p1[0] - p2[0]), abs(p1[1] - p2[1]))
            if off not in attention_offsets:
                attention_offsets[off] = len(attention_offsets)
            idxs.append(attention_offsets[off])
    idx_mat = jnp.array(idxs, dtype=jnp.int32).reshape(N, N)
    biases = 0.1 * jax.random.normal(keys[7], (NUM_HEADS, len(attention_offsets)),
                                     dtype=jnp.float32)
    p['ab'] = biases[:, idx_mat]                       # (nh, N, N)

    x = jax.random.normal(keys[8], (B, DIM, RES, RES), dtype=jnp.float32)

    steps = _batch_blocks(B)                           # 1 on v5e/v6e, 2 on v7x
    kp = prepare_params(p, B // steps)

    out = jax.block_until_ready(attention4d_forward(x, kp, steps))
    ref = jax.block_until_ready(reference_forward(x, p))

    assert out.shape == (B, DIM, RES, RES)
    # tolerance is loose because the softmax uses the approximate EUP reciprocal
    err = float(jnp.max(jnp.abs(out - ref)))
    assert err < 1e-2, f"mismatch vs reference: {err}"
    print("KERNEL_OK")
</pallas_src>

<mosaic_0001>
module attributes {stable_mosaic.version = 11 : i64} {
  func.func @fused_kernel(%arg0: i32, %arg1: memref<2x32x16xf32, #tpu.memory_space<vmem>>, %arg2: memref<32x64xf32, #tpu.memory_space<vmem>>, %arg3: memref<1x64xf32, #tpu.memory_space<vmem>>, %arg4: memref<288x32xf32, #tpu.memory_space<vmem>>, %arg5: memref<288x32xf32, #tpu.memory_space<vmem>>, %arg6: memref<1x32xf32, #tpu.memory_space<vmem>>, %arg7: memref<64x16xf32, #tpu.memory_space<vmem>>, %arg8: memref<2x2xf32, #tpu.memory_space<smem>>, %arg9: memref<2xf32, #tpu.memory_space<smem>>, %arg10: memref<2x2xf32, #tpu.memory_space<smem>>, %arg11: memref<2xf32, #tpu.memory_space<smem>>, %arg12: memref<32x32xf32, #tpu.memory_space<vmem>>, %arg13: memref<32x1xf32, #tpu.memory_space<vmem>>, %arg14: memref<2x32x16xf32, #tpu.memory_space<vmem>>) attributes {dimension_semantics = [#tpu.dimension_semantics<parallel>], iteration_bounds = array<i64: 1>, scalar_prefetch = 0 : i64, scratch_operands = 0 : i64, tpu.core_type = #tpu.core_type<tc>, window_params = [{transform_indices = @transform_0, window_bounds = array<i64: 2, 32, 16>}, {pipeline_mode = #tpu.pipeline_mode<synchronous>, transform_indices = @transform_1, window_bounds = array<i64: 32, 64>}, {pipeline_mode = #tpu.pipeline_mode<synchronous>, transform_indices = @transform_2, window_bounds = array<i64: 1, 64>}, {pipeline_mode = #tpu.pipeline_mode<synchronous>, transform_indices = @transform_3, window_bounds = array<i64: 288, 32>}, {pipeline_mode = #tpu.pipeline_mode<synchronous>, transform_indices = @transform_4, window_bounds = array<i64: 288, 32>}, {pipeline_mode = #tpu.pipeline_mode<synchronous>, transform_indices = @transform_5, window_bounds = array<i64: 1, 32>}, {pipeline_mode = #tpu.pipeline_mode<synchronous>, transform_indices = @transform_6, window_bounds = array<i64: 64, 16>}, {transform_indices = @transform_7, window_bounds = array<i64: 2, 2>}, {transform_indices = @transform_8, window_bounds = array<i64: 2>}, {transform_indices = @transform_9, window_bounds = array<i64: 2, 2>}, {transform_indices = @transform_10, window_bounds = array<i64: 2>}, {pipeline_mode = #tpu.pipeline_mode<synchronous>, transform_indices = @transform_11, window_bounds = array<i64: 32, 32>}, {pipeline_mode = #tpu.pipeline_mode<synchronous>, transform_indices = @transform_12, window_bounds = array<i64: 32, 1>}, {transform_indices = @transform_13, window_bounds = array<i64: 2, 32, 16>}]} {
    %c0 = arith.constant 0 : index
    %c0_0 = arith.constant 0 : index
    %0 = memref.load %arg8[%c0, %c0_0] : memref<2x2xf32, #tpu.memory_space<smem>>
    %c0_1 = arith.constant 0 : index
    %c1 = arith.constant 1 : index
    %1 = memref.load %arg8[%c0_1, %c1] : memref<2x2xf32, #tpu.memory_space<smem>>
    %c1_2 = arith.constant 1 : index
    %c0_3 = arith.constant 0 : index
    %2 = memref.load %arg8[%c1_2, %c0_3] : memref<2x2xf32, #tpu.memory_space<smem>>
    %c1_4 = arith.constant 1 : index
    %c1_5 = arith.constant 1 : index
    %3 = memref.load %arg8[%c1_4, %c1_5] : memref<2x2xf32, #tpu.memory_space<smem>>
    %c0_6 = arith.constant 0 : index
    %4 = memref.load %arg9[%c0_6] : memref<2xf32, #tpu.memory_space<smem>>
    %c1_7 = arith.constant 1 : index
    %5 = memref.load %arg9[%c1_7] : memref<2xf32, #tpu.memory_space<smem>>
    %c0_8 = arith.constant 0 : index
    %c0_9 = arith.constant 0 : index
    %6 = memref.load %arg10[%c0_8, %c0_9] : memref<2x2xf32, #tpu.memory_space<smem>>
    %c0_10 = arith.constant 0 : index
    %c1_11 = arith.constant 1 : index
    %7 = memref.load %arg10[%c0_10, %c1_11] : memref<2x2xf32, #tpu.memory_space<smem>>
    %c1_12 = arith.constant 1 : index
    %c0_13 = arith.constant 0 : index
    %8 = memref.load %arg10[%c1_12, %c0_13] : memref<2x2xf32, #tpu.memory_space<smem>>
    %c1_14 = arith.constant 1 : index
    %c1_15 = arith.constant 1 : index
    %9 = memref.load %arg10[%c1_14, %c1_15] : memref<2x2xf32, #tpu.memory_space<smem>>
    %c0_16 = arith.constant 0 : index
    %10 = memref.load %arg11[%c0_16] : memref<2xf32, #tpu.memory_space<smem>>
    %c1_17 = arith.constant 1 : index
    %11 = memref.load %arg11[%c1_17] : memref<2xf32, #tpu.memory_space<smem>>
    %c0_18 = arith.constant 0 : index
    %c0_19 = arith.constant 0 : index
    %c0_20 = arith.constant 0 : index
    %12 = vector.load %arg1[%c0_18, %c0_19, %c0_20] : memref<2x32x16xf32, #tpu.memory_space<vmem>>, vector<1x32x16xf32>
    %13 = vector.shape_cast %12 : vector<1x32x16xf32> to vector<32x16xf32>
    %c1_21 = arith.constant 1 : index
    %c0_22 = arith.constant 0 : index
    %c0_23 = arith.constant 0 : index
    %14 = vector.load %arg1[%c1_21, %c0_22, %c0_23] : memref<2x32x16xf32, #tpu.memory_space<vmem>>, vector<1x32x16xf32>
    %15 = vector.shape_cast %14 : vector<1x32x16xf32> to vector<32x16xf32>
    %16 = tpu.concatenate %13, %15 in 1 : vector<32x16xf32>, vector<32x16xf32> -> vector<32x32xf32>
    %c0_24 = arith.constant 0 : index
    %c0_25 = arith.constant 0 : index
    %17 = vector.load %arg2[%c0_24, %c0_25] : memref<32x64xf32, #tpu.memory_space<vmem>>, vector<32x64xf32>
    %cst = arith.constant dense<0.000000e+00> : vector<32x64xf32>
    %18 = tpu.matmul %16, %17, %cst {dimension_numbers = #tpu.dot_dimension_numbers<[0], [0], [1], [1], [0, 1, 1, 1], [], []>} : vector<32x32xf32>, vector<32x64xf32>, vector<32x64xf32> -> vector<32x64xf32>
    %c0_26 = arith.constant 0 : index
    %c0_27 = arith.constant 0 : index
    %19 = vector.load %arg3[%c0_26, %c0_27] : memref<1x64xf32, #tpu.memory_space<vmem>>, vector<1x64xf32>
    %20 = vector.broadcast %19 : vector<1x64xf32> to vector<32x64xf32>
    %21 = arith.addf %18, %20 : vector<32x64xf32>
    %22 = vector.extract_strided_slice %21 {offsets = [0, 32], sizes = [32, 32], strides = [1, 1]} : vector<32x64xf32> to vector<32x32xf32>
    %c0_28 = arith.constant 0 : index
    %c0_29 = arith.constant 0 : index
    %23 = vector.load %arg4[%c0_28, %c0_29] : memref<288x32xf32, #tpu.memory_space<vmem>>, vector<288x32xf32>
    %cst_30 = arith.constant dense<0.000000e+00> : vector<288x32xf32>
    %24 = tpu.matmul %23, %22, %cst_30 {dimension_numbers = #tpu.dot_dimension_numbers<[1], [0], [0], [1], [0, 0, 1, 1], [], []>} : vector<288x32xf32>, vector<32x32xf32>, vector<288x32xf32> -> vector<288x32xf32>
    %c0_31 = arith.constant 0 : index
    %c0_32 = arith.constant 0 : index
    %25 = vector.load %arg5[%c0_31, %c0_32] : memref<288x32xf32, #tpu.memory_space<vmem>>, vector<288x32xf32>
    %26 = arith.mulf %24, %25 : vector<288x32xf32>
    %c0_33 = arith.constant 0 : index
    %c0_34 = arith.constant 0 : index
    %27 = vector.load %arg6[%c0_33, %c0_34] : memref<1x32xf32, #tpu.memory_space<vmem>>, vector<1x32xf32>
    %28 = vector.extract_strided_slice %26 {offsets = [0, 0], sizes = [32, 32], strides = [1, 1]} : vector<288x32xf32> to vector<32x32xf32>
    %29 = vector.broadcast %27 : vector<1x32xf32> to vector<32x32xf32>
    %30 = arith.addf %29, %28 : vector<32x32xf32>
    %31 = vector.extract_strided_slice %26 {offsets = [32, 0], sizes = [32, 32], strides = [1, 1]} : vector<288x32xf32> to vector<32x32xf32>
    %32 = arith.addf %30, %31 : vector<32x32xf32>
    %33 = vector.extract_strided_slice %26 {offsets = [64, 0], sizes = [32, 32], strides = [1, 1]} : vector<288x32xf32> to vector<32x32xf32>
    %34 = arith.addf %32, %33 : vector<32x32xf32>
    %35 = vector.extract_strided_slice %26 {offsets = [96, 0], sizes = [32, 32], strides = [1, 1]} : vector<288x32xf32> to vector<32x32xf32>
    %36 = arith.addf %34, %35 : vector<32x32xf32>
    %37 = vector.extract_strided_slice %26 {offsets = [128, 0], sizes = [32, 32], strides = [1, 1]} : vector<288x32xf32> to vector<32x32xf32>
    %38 = arith.addf %36, %37 : vector<32x32xf32>
    %39 = vector.extract_strided_slice %26 {offsets = [160, 0], sizes = [32, 32], strides = [1, 1]} : vector<288x32xf32> to vector<32x32xf32>
    %40 = arith.addf %38, %39 : vector<32x32xf32>
    %41 = vector.extract_strided_slice %26 {offsets = [192, 0], sizes = [32, 32], strides = [1, 1]} : vector<288x32xf32> to vector<32x32xf32>
    %42 = arith.addf %40, %41 : vector<32x32xf32>
    %43 = vector.extract_strided_slice %26 {offsets = [224, 0], sizes = [32, 32], strides = [1, 1]} : vector<288x32xf32> to vector<32x32xf32>
    %44 = arith.addf %42, %43 : vector<32x32xf32>
    %45 = vector.extract_strided_slice %26 {offsets = [256, 0], sizes = [32, 32], strides = [1, 1]} : vector<288x32xf32> to vector<32x32xf32>
    %46 = arith.addf %44, %45 : vector<32x32xf32>
    %47 = vector.extract_strided_slice %21 {offsets = [0, 0], sizes = [16, 8], strides = [1, 1]} : vector<32x64xf32> to vector<16x8xf32>
    %48 = vector.extract_strided_slice %21 {offsets = [0, 16], sizes = [16, 8], strides = [1, 1]} : vector<32x64xf32> to vector<16x8xf32>
    %cst_35 = arith.constant dense<0.000000e+00> : vector<16x16xf32>
    %49 = tpu.matmul %47, %48, %cst_35 {dimension_numbers = #tpu.dot_dimension_numbers<[1], [1], [0], [0], [0, 0, 1, 0], [], []>} : vector<16x8xf32>, vector<16x8xf32>, vector<16x16xf32> -> vector<16x16xf32>
    %50 = vector.extract_strided_slice %21 {offsets = [0, 8], sizes = [16, 8], strides = [1, 1]} : vector<32x64xf32> to vector<16x8xf32>
    %51 = vector.extract_strided_slice %21 {offsets = [0, 24], sizes = [16, 8], strides = [1, 1]} : vector<32x64xf32> to vector<16x8xf32>
    %cst_36 = arith.constant dense<0.000000e+00> : vector<16x16xf32>
    %52 = tpu.matmul %50, %51, %cst_36 {dimension_numbers = #tpu.dot_dimension_numbers<[1], [1], [0], [0], [0, 0, 1, 0], [], []>} : vector<16x8xf32>, vector<16x8xf32>, vector<16x16xf32> -> vector<16x16xf32>
    %53 = vector.extract_strided_slice %21 {offsets = [16, 0], sizes = [16, 8], strides = [1, 1]} : vector<32x64xf32> to vector<16x8xf32>
    %54 = vector.extract_strided_slice %21 {offsets = [16, 16], sizes = [16, 8], strides = [1, 1]} : vector<32x64xf32> to vector<16x8xf32>
    %cst_37 = arith.constant dense<0.000000e+00> : vector<16x16xf32>
    %55 = tpu.matmul %53, %54, %cst_37 {dimension_numbers = #tpu.dot_dimension_numbers<[1], [1], [0], [0], [0, 0, 1, 0], [], []>} : vector<16x8xf32>, vector<16x8xf32>, vector<16x16xf32> -> vector<16x16xf32>
    %56 = vector.extract_strided_slice %21 {offsets = [16, 8], sizes = [16, 8], strides = [1, 1]} : vector<32x64xf32> to vector<16x8xf32>
    %57 = vector.extract_strided_slice %21 {offsets = [16, 24], sizes = [16, 8], strides = [1, 1]} : vector<32x64xf32> to vector<16x8xf32>
    %cst_38 = arith.constant dense<0.000000e+00> : vector<16x16xf32>
    %58 = tpu.matmul %56, %57, %cst_38 {dimension_numbers = #tpu.dot_dimension_numbers<[1], [1], [0], [0], [0, 0, 1, 0], [], []>} : vector<16x8xf32>, vector<16x8xf32>, vector<16x16xf32> -> vector<16x16xf32>
    %59 = tpu.concatenate %49, %52, %55, %58 in 0 : vector<16x16xf32>, vector<16x16xf32>, vector<16x16xf32>, vector<16x16xf32> -> vector<64x16xf32>
    %c0_39 = arith.constant 0 : index
    %c0_40 = arith.constant 0 : index
    %60 = vector.load %arg7[%c0_39, %c0_40] : memref<64x16xf32, #tpu.memory_space<vmem>>, vector<64x16xf32>
    %61 = arith.addf %59, %60 : vector<64x16xf32>
    %62 = vector.extract_strided_slice %61 {offsets = [0, 0], sizes = [16, 16], strides = [1, 1]} : vector<64x16xf32> to vector<16x16xf32>
    %63 = vector.extract_strided_slice %61 {offsets = [16, 0], sizes = [16, 16], strides = [1, 1]} : vector<64x16xf32> to vector<16x16xf32>
    %64 = vector.broadcast %0 : f32 to vector<16x16xf32>
    %65 = arith.mulf %64, %62 : vector<16x16xf32>
    %66 = vector.broadcast %4 : f32 to vector<16x16xf32>
    %67 = arith.addf %65, %66 : vector<16x16xf32>
    %68 = vector.broadcast %1 : f32 to vector<16x16xf32>
    %69 = arith.mulf %68, %63 : vector<16x16xf32>
    %70 = arith.addf %67, %69 : vector<16x16xf32>
    %71 = vector.broadcast %2 : f32 to vector<16x16xf32>
    %72 = arith.mulf %71, %62 : vector<16x16xf32>
    %73 = vector.broadcast %5 : f32 to vector<16x16xf32>
    %74 = arith.addf %72, %73 : vector<16x16xf32>
    %75 = vector.broadcast %3 : f32 to vector<16x16xf32>
    %76 = arith.mulf %75, %63 : vector<16x16xf32>
    %77 = arith.addf %74, %76 : vector<16x16xf32>
    %78 = vector.extract_strided_slice %61 {offsets = [32, 0], sizes = [16, 16], strides = [1, 1]} : vector<64x16xf32> to vector<16x16xf32>
    %79 = vector.extract_strided_slice %61 {offsets = [48, 0], sizes = [16, 16], strides = [1, 1]} : vector<64x16xf32> to vector<16x16xf32>
    %80 = vector.broadcast %0 : f32 to vector<16x16xf32>
    %81 = arith.mulf %80, %78 : vector<16x16xf32>
    %82 = vector.broadcast %4 : f32 to vector<16x16xf32>
    %83 = arith.addf %81, %82 : vector<16x16xf32>
    %84 = vector.broadcast %1 : f32 to vector<16x16xf32>
    %85 = arith.mulf %84, %79 : vector<16x16xf32>
    %86 = arith.addf %83, %85 : vector<16x16xf32>
    %87 = vector.broadcast %2 : f32 to vector<16x16xf32>
    %88 = arith.mulf %87, %78 : vector<16x16xf32>
    %89 = vector.broadcast %5 : f32 to vector<16x16xf32>
    %90 = arith.addf %88, %89 : vector<16x16xf32>
    %91 = vector.broadcast %3 : f32 to vector<16x16xf32>
    %92 = arith.mulf %91, %79 : vector<16x16xf32>
    %93 = arith.addf %90, %92 : vector<16x16xf32>
    %94 = tpu.concatenate %70, %77, %86, %93 in 0 : vector<16x16xf32>, vector<16x16xf32>, vector<16x16xf32>, vector<16x16xf32> -> vector<64x16xf32>
    %cst_41 = arith.constant dense<0xFF800000> : vector<64xf32>
    %95 = vector.multi_reduction <maximumf>, %94, %cst_41 [1] : vector<64x16xf32> to vector<64xf32>
    %96 = vector.shape_cast %95 : vector<64xf32> to vector<64x1xf32>
    %97 = vector.broadcast %96 : vector<64x1xf32> to vector<64x16xf32>
    %98 = arith.subf %94, %97 : vector<64x16xf32>
    %99 = math.exp %98 : vector<64x16xf32>
    %cst_42 = arith.constant dense<0.000000e+00> : vector<64xf32>
    %100 = vector.multi_reduction <add>, %99, %cst_42 [1] : vector<64x16xf32> to vector<64xf32>
    %101 = vector.shape_cast %100 : vector<64xf32> to vector<64x1xf32>
    %102 = tpu.reciprocal %101 {approx = true} : vector<64x1xf32> -> vector<64x1xf32>
    %103 = vector.broadcast %102 : vector<64x1xf32> to vector<64x16xf32>
    %104 = arith.mulf %99, %103 : vector<64x16xf32>
    %105 = vector.extract_strided_slice %104 {offsets = [0, 0], sizes = [16, 16], strides = [1, 1]} : vector<64x16xf32> to vector<16x16xf32>
    %106 = vector.extract_strided_slice %104 {offsets = [16, 0], sizes = [16, 16], strides = [1, 1]} : vector<64x16xf32> to vector<16x16xf32>
    %107 = vector.broadcast %6 : f32 to vector<16x16xf32>
    %108 = arith.mulf %107, %105 : vector<16x16xf32>
    %109 = vector.broadcast %10 : f32 to vector<16x16xf32>
    %110 = arith.addf %108, %109 : vector<16x16xf32>
    %111 = vector.broadcast %7 : f32 to vector<16x16xf32>
    %112 = arith.mulf %111, %106 : vector<16x16xf32>
    %113 = arith.addf %110, %112 : vector<16x16xf32>
    %114 = vector.broadcast %8 : f32 to vector<16x16xf32>
    %115 = arith.mulf %114, %105 : vector<16x16xf32>
    %116 = vector.broadcast %11 : f32 to vector<16x16xf32>
    %117 = arith.addf %115, %116 : vector<16x16xf32>
    %118 = vector.broadcast %9 : f32 to vector<16x16xf32>
    %119 = arith.mulf %118, %106 : vector<16x16xf32>
    %120 = arith.addf %117, %119 : vector<16x16xf32>
    %121 = vector.extract_strided_slice %104 {offsets = [32, 0], sizes = [16, 16], strides = [1, 1]} : vector<64x16xf32> to vector<16x16xf32>
    %122 = vector.extract_strided_slice %104 {offsets = [48, 0], sizes = [16, 16], strides = [1, 1]} : vector<64x16xf32> to vector<16x16xf32>
    %123 = vector.broadcast %6 : f32 to vector<16x16xf32>
    %124 = arith.mulf %123, %121 : vector<16x16xf32>
    %125 = vector.broadcast %10 : f32 to vector<16x16xf32>
    %126 = arith.addf %124, %125 : vector<16x16xf32>
    %127 = vector.broadcast %7 : f32 to vector<16x16xf32>
    %128 = arith.mulf %127, %122 : vector<16x16xf32>
    %129 = arith.addf %126, %128 : vector<16x16xf32>
    %130 = vector.broadcast %8 : f32 to vector<16x16xf32>
    %131 = arith.mulf %130, %121 : vector<16x16xf32>
    %132 = vector.broadcast %11 : f32 to vector<16x16xf32>
    %133 = arith.addf %131, %132 : vector<16x16xf32>
    %134 = vector.broadcast %9 : f32 to vector<16x16xf32>
    %135 = arith.mulf %134, %122 : vector<16x16xf32>
    %136 = arith.addf %133, %135 : vector<16x16xf32>
    %137 = tpu.concatenate %113, %120, %129, %136 in 0 : vector<16x16xf32>, vector<16x16xf32>, vector<16x16xf32>, vector<16x16xf32> -> vector<64x16xf32>
    %138 = vector.extract_strided_slice %137 {offsets = [0, 0], sizes = [16, 16], strides = [1, 1]} : vector<64x16xf32> to vector<16x16xf32>
    %139 = vector.extract_strided_slice %21 {offsets = [0, 32], sizes = [16, 16], strides = [1, 1]} : vector<32x64xf32> to vector<16x16xf32>
    %cst_43 = arith.constant dense<0.000000e+00> : vector<16x16xf32>
    %140 = tpu.matmul %138, %139, %cst_43 {dimension_numbers = #tpu.dot_dimension_numbers<[1], [0], [0], [1], [0, 0, 1, 1], [], []>} : vector<16x16xf32>, vector<16x16xf32>, vector<16x16xf32> -> vector<16x16xf32>
    %141 = vector.extract_strided_slice %137 {offsets = [16, 0], sizes = [16, 16], strides = [1, 1]} : vector<64x16xf32> to vector<16x16xf32>
    %142 = vector.extract_strided_slice %21 {offsets = [0, 48], sizes = [16, 16], strides = [1, 1]} : vector<32x64xf32> to vector<16x16xf32>
    %cst_44 = arith.constant dense<0.000000e+00> : vector<16x16xf32>
    %143 = tpu.matmul %141, %142, %cst_44 {dimension_numbers = #tpu.dot_dimension_numbers<[1], [0], [0], [1], [0, 0, 1, 1], [], []>} : vector<16x16xf32>, vector<16x16xf32>, vector<16x16xf32> -> vector<16x16xf32>
    %144 = tpu.concatenate %140, %143 in 1 : vector<16x16xf32>, vector<16x16xf32> -> vector<16x32xf32>
    %145 = vector.extract_strided_slice %137 {offsets = [32, 0], sizes = [16, 16], strides = [1, 1]} : vector<64x16xf32> to vector<16x16xf32>
    %146 = vector.extract_strided_slice %21 {offsets = [16, 32], sizes = [16, 16], strides = [1, 1]} : vector<32x64xf32> to vector<16x16xf32>
    %cst_45 = arith.constant dense<0.000000e+00> : vector<16x16xf32>
    %147 = tpu.matmul %145, %146, %cst_45 {dimension_numbers = #tpu.dot_dimension_numbers<[1], [0], [0], [1], [0, 0, 1, 1], [], []>} : vector<16x16xf32>, vector<16x16xf32>, vector<16x16xf32> -> vector<16x16xf32>
    %148 = vector.extract_strided_slice %137 {offsets = [48, 0], sizes = [16, 16], strides = [1, 1]} : vector<64x16xf32> to vector<16x16xf32>
    %149 = vector.extract_strided_slice %21 {offsets = [16, 48], sizes = [16, 16], strides = [1, 1]} : vector<32x64xf32> to vector<16x16xf32>
    %cst_46 = arith.constant dense<0.000000e+00> : vector<16x16xf32>
    %150 = tpu.matmul %148, %149, %cst_46 {dimension_numbers = #tpu.dot_dimension_numbers<[1], [0], [0], [1], [0, 0, 1, 1], [], []>} : vector<16x16xf32>, vector<16x16xf32>, vector<16x16xf32> -> vector<16x16xf32>
    %151 = tpu.concatenate %147, %150 in 1 : vector<16x16xf32>, vector<16x16xf32> -> vector<16x32xf32>
    %152 = tpu.concatenate %144, %151 in 0 : vector<16x32xf32>, vector<16x32xf32> -> vector<32x32xf32>
    %153 = arith.addf %152, %46 : vector<32x32xf32>
    %cst_47 = arith.constant 0.000000e+00 : f32
    %154 = vector.broadcast %cst_47 : f32 to vector<32x32xf32>
    %155 = arith.maximumf %153, %154 : vector<32x32xf32>
    %c0_48 = arith.constant 0 : index
    %c0_49 = arith.constant 0 : index
    %156 = vector.load %arg12[%c0_48, %c0_49] : memref<32x32xf32, #tpu.memory_space<vmem>>, vector<32x32xf32>
    %cst_50 = arith.constant dense<0.000000e+00> : vector<32x32xf32>
    %157 = tpu.matmul %156, %155, %cst_50 {dimension_numbers = #tpu.dot_dimension_numbers<[1], [1], [0], [0], [0, 0, 1, 0], [], []>} : vector<32x32xf32>, vector<32x32xf32>, vector<32x32xf32> -> vector<32x32xf32>
    %c0_51 = arith.constant 0 : index
    %c0_52 = arith.constant 0 : index
    %158 = vector.load %arg13[%c0_51, %c0_52] : memref<32x1xf32, #tpu.memory_space<vmem>>, vector<32x1xf32>
    %159 = vector.broadcast %158 : vector<32x1xf32> to vector<32x32xf32>
    %160 = arith.addf %157, %159 : vector<32x32xf32>
    %161 = vector.extract_strided_slice %160 {offsets = [0, 0], sizes = [32, 16], strides = [1, 1]} : vector<32x32xf32> to vector<32x16xf32>
    %c0_53 = arith.constant 0 : index
    %c0_54 = arith.constant 0 : index
    %c0_55 = arith.constant 0 : index
    %162 = vector.load %arg14[%c0_53, %c0_54, %c0_55] : memref<2x32x16xf32, #tpu.memory_space<vmem>>, vector<1x32x16xf32>
    %163 = vector.shape_cast %162 : vector<1x32x16xf32> to vector<32x16xf32>
    %164 = vector.shape_cast %161 : vector<32x16xf32> to vector<1x32x16xf32>
    tpu.vector_store %arg14[%c0_53, %c0_54, %c0_55], %164 {strides = array<i32>} : memref<2x32x16xf32, #tpu.memory_space<vmem>>, vector<1x32x16xf32>,
    %165 = vector.extract_strided_slice %160 {offsets = [0, 16], sizes = [32, 16], strides = [1, 1]} : vector<32x32xf32> to vector<32x16xf32>
    %c1_56 = arith.constant 1 : index
    %c0_57 = arith.constant 0 : index
    %c0_58 = arith.constant 0 : index
    %166 = vector.load %arg14[%c1_56, %c0_57, %c0_58] : memref<2x32x16xf32, #tpu.memory_space<vmem>>, vector<1x32x16xf32>
    %167 = vector.shape_cast %166 : vector<1x32x16xf32> to vector<32x16xf32>
    %168 = vector.shape_cast %165 : vector<32x16xf32> to vector<1x32x16xf32>
    tpu.vector_store %arg14[%c1_56, %c0_57, %c0_58], %168 {strides = array<i32>} : memref<2x32x16xf32, #tpu.memory_space<vmem>>, vector<1x32x16xf32>,
    return
  }
  func.func @transform_0(%arg0: i32) -> (i32, i32, i32) {
    %c0_i32 = arith.constant 0 : i32
    %c0_i32_0 = arith.constant 0 : i32
    %c0_i32_1 = arith.constant 0 : i32
    return %arg0, %c0_i32, %c0_i32_0 : i32, i32, i32
  }
  func.func @transform_1(%arg0: i32) -> (i32, i32) {
    %c0_i32 = arith.constant 0 : i32
    %c0_i32_0 = arith.constant 0 : i32
    %c0_i32_1 = arith.constant 0 : i32
    return %c0_i32, %c0_i32_0 : i32, i32
  }
  func.func @transform_2(%arg0: i32) -> (i32, i32) {
    %c0_i32 = arith.constant 0 : i32
    %c0_i32_0 = arith.constant 0 : i32
    %c0_i32_1 = arith.constant 0 : i32
    return %c0_i32, %c0_i32_0 : i32, i32
  }
  func.func @transform_3(%arg0: i32) -> (i32, i32) {
    %c0_i32 = arith.constant 0 : i32
    %c0_i32_0 = arith.constant 0 : i32
    %c0_i32_1 = arith.constant 0 : i32
    return %c0_i32, %c0_i32_0 : i32, i32
  }
  func.func @transform_4(%arg0: i32) -> (i32, i32) {
    %c0_i32 = arith.constant 0 : i32
    %c0_i32_0 = arith.constant 0 : i32
    %c0_i32_1 = arith.constant 0 : i32
    return %c0_i32, %c0_i32_0 : i32, i32
  }
  func.func @transform_5(%arg0: i32) -> (i32, i32) {
    %c0_i32 = arith.constant 0 : i32
    %c0_i32_0 = arith.constant 0 : i32
    %c0_i32_1 = arith.constant 0 : i32
    return %c0_i32, %c0_i32_0 : i32, i32
  }
  func.func @transform_6(%arg0: i32) -> (i32, i32) {
    %c0_i32 = arith.constant 0 : i32
    %c0_i32_0 = arith.constant 0 : i32
    %c0_i32_1 = arith.constant 0 : i32
    return %c0_i32, %c0_i32_0 : i32, i32
  }
  func.func @transform_7(%arg0: i32) -> (i32, i32) {
    %c0_i32 = arith.constant 0 : i32
    %c0_i32_0 = arith.constant 0 : i32
    %c0_i32_1 = arith.constant 0 : i32
    return %c0_i32, %c0_i32_0 : i32, i32
  }
  func.func @transform_8(%arg0: i32) -> i32 {
    %c0_i32 = arith.constant 0 : i32
    %c0_i32_0 = arith.constant 0 : i32
    return %c0_i32 : i32
  }
  func.func @transform_9(%arg0: i32) -> (i32, i32) {
    %c0_i32 = arith.constant 0 : i32
    %c0_i32_0 = arith.constant 0 : i32
    %c0_i32_1 = arith.constant 0 : i32
    return %c0_i32, %c0_i32_0 : i32, i32
  }
  func.func @transform_10(%arg0: i32) -> i32 {
    %c0_i32 = arith.constant 0 : i32
    %c0_i32_0 = arith.constant 0 : i32
    return %c0_i32 : i32
  }
  func.func @transform_11(%arg0: i32) -> (i32, i32) {
    %c0_i32 = arith.constant 0 : i32
    %c0_i32_0 = arith.constant 0 : i32
    %c0_i32_1 = arith.constant 0 : i32
    return %c0_i32, %c0_i32_0 : i32, i32
  }
  func.func @transform_12(%arg0: i32) -> (i32, i32) {
    %c0_i32 = arith.constant 0 : i32
    %c0_i32_0 = arith.constant 0 : i32
    %c0_i32_1 = arith.constant 0 : i32
    return %c0_i32, %c0_i32_0 : i32, i32
  }
  func.func @transform_13(%arg0: i32) -> (i32, i32, i32) {
    %c0_i32 = arith.constant 0 : i32
    %c0_i32_0 = arith.constant 0 : i32
    %c0_i32_1 = arith.constant 0 : i32
    return %arg0, %c0_i32, %c0_i32_0 : i32, i32, i32
  }
}

</mosaic_0001>

<bundles_post_ra>
// kernel: attention4d_forward.1
= control target key start
LH: loop header
LB: loop body
LE: loop exit
PB: predicated region body
PF: predicated region fallthrough
CT: control target
= control target key end

     0   :  { %18 = vsyncpa [#allocation3], 0  ;;  %s2178_s0 = inlined_call_operand.vmem [shape: f32[2,32,16], index: 0, kind: input, shape index: {}]   ;;  %s2179_s1 = inlined_call_operand.vmem [shape: f32[32,64], index: 1, kind: input, shape index: {}]   ;;  %s2180_s2 = inlined_call_operand.vmem [shape: f32[1,64], index: 2, kind: input, shape index: {}]   ;;  %s2181_s3 = inlined_call_operand.vmem [shape: f32[288,32], index: 3, kind: input, shape index: {}]   ;;  %s2182_s4 = inlined_call_operand.vmem [shape: f32[288,32], index: 4, kind: input, shape index: {}]   ;;  %s2183_s5 = inlined_call_operand.vmem [shape: f32[1,32], index: 5, kind: input, shape index: {}]   ;;  %s2184_s6 = inlined_call_operand.vmem [shape: f32[64,16], index: 6, kind: input, shape index: {}]   ;;  %s2185_s7 = inlined_call_operand.vmem [shape: f32[2,2], index: 7, kind: input, shape index: {}]   ;;  %s2186_s8 = inlined_call_operand.vmem [shape: f32[2], index: 8, kind: input, shape index: {}]   ;;  %s2187_s9 = inlined_call_operand.vmem [shape: f32[2,2], index: 9, kind: input, shape index: {}]   ;;  %s2188_s10 = inlined_call_operand.vmem [shape: f32[2], index: 10, kind: input, shape index: {}]   ;;  %s2189_s11 = inlined_call_operand.vmem [shape: f32[32,32], index: 11, kind: input, shape index: {}]   ;;  %s2190_s12 = inlined_call_operand.vmem [shape: f32[32,1], index: 12, kind: input, shape index: {}]   ;;  %s2191_s13 = inlined_call_operand.vmem [shape: f32[2,32,16], index: 13, kind: output, shape index: {}]  }
   0x1   :  { %19 = vsyncpa [#allocation5], 0  ;;  %s49_s27 = sshll.u32 %s2186_s8, 4  ;;  %s50_s27 = int_to_ptr.vmem [resolvable:$true] %s49_s27 }
   0x2   :  { %20 = vsyncpa [#allocation8], 0  ;;  %s40_s30 = sshll.u32 %s2185_s7, 4  ;;  %s1434_s14 = smov [#allocation4]   ;;  %s41_s30 = int_to_ptr.vmem [resolvable:$true] %s40_s30 }
   0x3   :  { %52 = dma.vmem_to_smem %s50_s27, 16, %s1434_s14, [#allocation5]  }
   0x4   :  { %s1435_s15 = smov [#allocation2]   ;;  %s58_s18 = sshll.u32 %s2187_s9, 4  ;;  %s59_s18 = int_to_ptr.vmem [resolvable:$true] %s58_s18 }
   0x5   :  { %43 = dma.vmem_to_smem %s41_s30, 32, %s1435_s15, [#allocation3]  }
   0x6   :  { %s67_s8 = sshll.u32 %s2188_s10, 4  ;;  %s1436_s21 = smov [#allocation6]   ;;  %s68_s8 = int_to_ptr.vmem [resolvable:$true] %s67_s8 }
   0x7   :  { %61 = dma.vmem_to_smem %s59_s18, 32, %s1436_s21, [#allocation5]  }
   0x8   :  { %s1437_s22 = smov [#allocation7]  }
   0x9   :  { %70 = dma.vmem_to_smem %s68_s8, 16, %s1437_s22, [#allocation8]  }
   0xa   :  { %1428 = dma.done.wait [#allocation3], 32  }
   0xb   :  { %1429 = vsyncadd [#allocation3], 4294967264 }
   0xc   :  { %1430 = dma.done.wait [#allocation5], 48  }
   0xd   :  { %1431 = vsyncadd [#allocation5], 4294967248 }
   0xe   :  { %1432 = dma.done.wait [#allocation8], 16  }
   0xf   :  { %1433 = vsyncadd [#allocation8], 4294967280 }
  0x10   :  { %91 = sfence }
  0x11   :  { %v1219_v0 = vld [vmem:[%s2178_s0 + $0x20] sm:$0xff]  ;;  %v1221_v1 = vld [vmem:[%s2178_s0 + $0x30] sm:$0xff]  ;;  %s1438_s10 = smov 16   ;;  %v1220_v2 = vld [vmem:[%s2178_s0 + $0x28] sm:$0xff]  ;;  %vm129_vm0 = vcmask 130048   ;;  %vm174_vm1 = vcmask 261120  }
  0x12   :  { %117 = vrot.lane.b32.xlu0 %v1219_v0, %s1438_s10  ;;  %121 = vrot.lane.b32.xlu1 %v1221_v1, %s1438_s10  ;;  %v1222_v3 = vld [vmem:[%s2178_s0 + $0x38] sm:$0xff]  ;;  %v136_v5 = vld [vmem:[%s2179_s1 + $0x10] sm:$0xff]  ;;  %s1440_s26 = smov 96   ;;  %s1441_s27 = smov 104   ;;  %vm617_vm2 = vcmask 64512  }
  0x13   :  { %v137_v4 = vld [vmem:[%s2179_s1 + $0x18] sm:$0xff]  ;;  %v135_v6 = vld [vmem:[%s2179_s1 + $0x8] sm:$0xff]  ;;  %v104_v7 = vld [vmem:[%s2178_s0] sm:$0xff]  ;;  %s1212_s20 = sld [smem:[#allocation2 + $0x80]] }
  0x14   :  { %199 = vmatpush.msra.mxu0 %v137_v4  ;;  %v134_v8 = vld [vmem:[%s2179_s1] sm:$0xff]  ;;  %v105_v11 = vld [vmem:[%s2178_s0 + $0x8] sm:$0xff]  ;;  %v106_v15 = vld [vmem:[%s2178_s0 + $0x10] sm:$0xff]  ;;  %s92_s8 = sld [smem:[#allocation2]] }
  0x15   :  { %v107_v18 = vld [vmem:[%s2178_s0 + $0x18] sm:$0xff]  ;;  %v1346_v24 = vld [vmem:[%s2180_s2] ss:$0 sm:$0xff]  ;;  %s1439_s0 = smov 120   ;;  %s1442_s2 = smov 112   ;;  %v238_v45 = vld [vmem:[%s2181_s3 + $0xb0] sm:$0xff] }
  0x16   :  { %200 = vmatpush.msra.mxu0 %v136_v5  ;;  %v223_v44 = vld [vmem:[%s2181_s3 + $0x38] sm:$0xff]  ;;  %v216_v47 = vld [vmem:[%s2181_s3] sm:$0xff]  ;;  %v217_v53 = vld [vmem:[%s2181_s3 + $0x8] sm:$0xff]  ;;  %s1214_s21 = sld [smem:[#allocation4 + $0x1]] }
  0x17   :  { %v243_v46 = vld [vmem:[%s2181_s3 + $0xd8] sm:$0xff]  ;;  %v224_v49 = vld [vmem:[%s2181_s3 + $0x40] sm:$0xff]  ;;  %v225_v55 = vld [vmem:[%s2181_s3 + $0x48] sm:$0xff]  ;;  %s96_s22 = sld [smem:[#allocation4]] }
  0x18   :  { %201 = vmatpush.msra.mxu0 %v135_v6  ;;  %v239_v50 = vld [vmem:[%s2181_s3 + $0xb8] sm:$0xff]  ;;  %v244_v51 = vld [vmem:[%s2181_s3 + $0xe0] sm:$0xff]  ;;  %v245_v57 = vld [vmem:[%s2181_s3 + $0xe8] sm:$0xff]  ;;  %s1211_s1 = sld [smem:[#allocation2 + $0x1]] }
  0x19   :  { %v240_v56 = vld [vmem:[%s2181_s3 + $0xc0] sm:$0xff]  ;;  %v218_v59 = vld [vmem:[%s2181_s3 + $0x10] sm:$0xff]  ;;  %v241_v62 = vld [vmem:[%s2181_s3 + $0xc8] sm:$0xff]  ;;  %s1213_s9 = sld [smem:[#allocation2 + $0x81]] }
  0x1a   :  { %119 = vrot.lane.b32.xlu0 %v1220_v2, %s1438_s10  ;;  %123 = vrot.lane.b32.xlu1 %v1222_v3, %s1438_s10  ;;  %v226_v61 = vld [vmem:[%s2181_s3 + $0x50] sm:$0xff]  ;;  %v219_v0 = vld [vmem:[%s2181_s3 + $0x18] sm:$0xff]  ;;  %s98_s16 = sld [smem:[#allocation6]] }
  0x1b   :  { %202 = vmatpush.msra.mxu0 %v134_v8  ;;  %v246_v63 = vld [vmem:[%s2181_s3 + $0xf0] sm:$0xff]  ;;  %v227_v2 = vld [vmem:[%s2181_s3 + $0x58] sm:$0xff]  ;;  %v220_v5 = vld [vmem:[%s2181_s3 + $0x20] sm:$0xff]  ;;  %s1215_s17 = sld [smem:[#allocation6 + $0x1]] }
  0x1c   :  { %v242_v3 = vld [vmem:[%s2181_s3 + $0xd0] sm:$0xff]  ;;  %v247_v4 = vld [vmem:[%s2181_s3 + $0xf8] sm:$0xff]  ;;  %v228_v6 = vld [vmem:[%s2181_s3 + $0x60] sm:$0xff]  ;;  %s102_s18 = sld [smem:[#allocation7]] }
  0x1d   :  { %v221_v8 = vld [vmem:[%s2181_s3 + $0x28] sm:$0xff]  ;;  %s1218_s19 = sld [smem:[#allocation7 + $0x1]] }
  0x84   :  { %v118_v9 = vpop.permute.xlu0 %117  ;;  %v122_v14 = vpop.permute.xlu1 %121 }
  0x85   :  { %v130_v10 = vsel %vm129_vm0, %v104_v7, %v118_v9  ;;  %v132_v16 = vsel %vm129_vm0, %v106_v15, %v122_v14  ;;  %v248_v7 = vld [vmem:[%s2181_s3 + $0x100] sm:$0xff]  ;;  %v229_v9 = vld [vmem:[%s2181_s3 + $0x68] sm:$0xff]  ;;  %v231_v14 = vld [vmem:[%s2181_s3 + $0x78] sm:$0xff] }
  0x86   :  { %142 = vxpose.xlu2.b32.start [1/4] (short) (narrow) %v130_v10, 32  ;;  %v249_v10 = vld [vmem:[%s2181_s3 + $0x108] sm:$0xff]  ;;  %v251_v15 = vld [vmem:[%s2181_s3 + $0x118] sm:$0xff] }
  0x8c   :  { %v120_v12 = vpop.permute.xlu0 %119  ;;  %v124_v17 = vpop.permute.xlu1 %123 }
  0x8d   :  { %v131_v13 = vsel %vm129_vm0, %v105_v11, %v120_v12  ;;  %v133_v19 = vsel %vm129_vm0, %v107_v18, %v124_v17  ;;  %v222_v11 = vld [vmem:[%s2181_s3 + $0x30] sm:$0xff]  ;;  %v233_v18 = vld [vmem:[%s2181_s3 + $0x88] sm:$0xff] }
  0x8e   :  { %143 = vxpose.xlu2.b32.cont [2/4] (short) (narrow) %v131_v13, 32  ;;  %v230_v12 = vld [vmem:[%s2181_s3 + $0x70] sm:$0xff] }
  0x8f   :  { %v250_v13 = vld [vmem:[%s2181_s3 + $0x110] sm:$0xff] }
  0x96   :  { %144 = vxpose.xlu2.b32.cont [3/4] (short) (narrow) %v132_v16, 32  ;;  %v232_v16 = vld [vmem:[%s2181_s3 + $0x80] sm:$0xff] }
  0x9e   :  { %145 = vxpose.xlu2.b32.end [4/4] (short) (narrow) %v133_v19, 32  ;;  %v234_v19 = vld [vmem:[%s2181_s3 + $0x90] sm:$0xff] }
 0x11f   :  { %v158_v20 = vpop.trf.xlu2 }
 0x120   :  { %1223 = vmatmul.msk.f32.vlgmr.msra.gmra.mxu0 %vm174_vm1, %v158_v20 }
 0x127   :  { %v159_v21 = vpop.trf.xlu2 }
 0x128   :  { %1224 = vmatmul.msk.f32.gmra.mxu0 %vm174_vm1, %v159_v21  ;;  %v235_v21 = vld [vmem:[%s2181_s3 + $0x98] sm:$0xff] }
 0x12f   :  { %v160_v22 = vpop.trf.xlu2 }
 0x130   :  { %1225 = vmatmul.msk.f32.gmra.mxu0 %vm174_vm1, %v160_v22 }
 0x137   :  { %v161_v23 = vpop.trf.xlu2 }
 0x138   :  { %1226 = vmatmul.msk.f32.gmra.mxu0 %vm174_vm1, %v161_v23  ;;  %v236_v23 = vld [vmem:[%s2181_s3 + $0xa0] sm:$0xff] }
 0x19d   :  { %v204_v25 = vpop.f32.mrf.mxu0 }
 0x19e   :  { %v1578_v26 = vadd.f32 %v1346_v24, %v204_v25 }
 0x1a0   :  { %649 = vrot.lane.b32.xlu2 %v1578_v26, %s1439_s0 }
 0x1a5   :  { %v207_v27 = vpop.f32.mrf.mxu0 }
 0x1a6   :  { %v1581_v28 = vadd.f32 %v1346_v24, %v207_v27 }
 0x1a8   :  { %v1328_v29 = vpack.i.bf16 %v1578_v26, %v1581_v28 }
 0x1aa   :  { %1329 = vrot.lane.b32.xlu1 %v1328_v29, %s1440_s26 }
 0x1ad   :  { %v210_v30 = vpop.f32.mrf.mxu0 }
 0x1ae   :  { %v1586_v32 = vadd.f32 %v1346_v24, %v210_v30 }
 0x1b2   :  { %655 = vrot.lane.b32.xlu1 %v1581_v28, %s1441_s27 }
 0x1b5   :  { %v213_v31 = vpop.f32.mrf.mxu0 }
 0x1b6   :  { %v1588_v33 = vadd.f32 %v1346_v24, %v213_v31  ;;  %v237_v24 = vld [vmem:[%s2181_s3 + $0xa8] sm:$0xff]  ;;  %s1216_s3 = sld [smem:[#allocation6 + $0x80]] }
 0x1b8   :  { %v1323_v34 = vpack.i.bf16 %v1586_v32, %v1588_v33 }
 0x1ba   :  { %653 = vrot.lane.b32.xlu1 %v1578_v26, %s1441_s27  ;;  %1324 = vrot.lane.b32.xlu0 %v1323_v34, %s1440_s26 }
 0x1c2   :  { %651 = vrot.lane.b32.xlu1 %v1581_v28, %s1439_s0  ;;  %615 = vrot.lane.b32.xlu0 %v1581_v28, %s1442_s2 }
 0x1ca   :  { %688 = vrot.lane.b32.xlu1 %v1586_v32, %s1442_s2  ;;  %613 = vrot.lane.b32.xlu0 %v1578_v26, %s1442_s2 }
 0x1d2   :  { %723 = vrot.lane.b32.xlu1 %v1586_v32, %s1439_s0  ;;  %690 = vrot.lane.b32.xlu0 %v1588_v33, %s1442_s2 }
 0x1da   :  { %729 = vrot.lane.b32.xlu0 %v1588_v33, %s1441_s27 }
 0x1e2   :  { %727 = vrot.lane.b32.xlu0 %v1586_v32, %s1441_s27 }
 0x1ea   :  { %725 = vrot.lane.b32.xlu0 %v1588_v33, %s1439_s0 }
 0x1fa   :  { %v650_v17 = vpop.permute.xlu2 %649 }
 0x21c   :  { %v1330_v35 = vpop.permute.xlu1 %1329 }
 0x21d   :  { %v1331_v40 = vunpack.i.l.bf16 %v1330_v35  ;;  %v1332_v41 = vunpack.i.h.bf16 %v1330_v35 }
 0x224   :  { %v656_v36 = vpop.permute.xlu1 %655 }
 0x22c   :  { %v1325_v37 = vpop.permute.xlu0 %1324  ;;  %v654_v42 = vpop.permute.xlu1 %653 }
 0x22d   :  { %v1606_v38 = vunpack.i.l.bf16 %v1325_v37  ;;  %v1608_v39 = vunpack.i.h.bf16 %v1325_v37 }
 0x22f   :  { %388 = vmatpush.msrb.mxu0 %v1606_v38  ;;  %1299 = vmatpush.msra.mxu1 %v1606_v38 }
 0x230   :  { %1300 = vmatpush.msra.mxu2 %v1606_v38  ;;  %1301 = vmatpush.msra.mxu3 %v1606_v38 }
 0x231   :  { %389 = vmatpush.msrb.mxu0 %v1608_v39  ;;  %1302 = vmatpush.msra.mxu1 %v1608_v39 }
 0x232   :  { %1303 = vmatpush.msra.mxu2 %v1608_v39  ;;  %1304 = vmatpush.msra.mxu3 %v1608_v39 }
 0x233   :  { %390 = vmatpush.msrb.mxu0 %v1331_v40  ;;  %1305 = vmatpush.msra.mxu1 %v1331_v40 }
 0x234   :  { %1306 = vmatpush.msra.mxu2 %v1331_v40  ;;  %1307 = vmatpush.msra.mxu3 %v1331_v40  ;;  %v616_v43 = vpop.permute.xlu0 %615  ;;  %v1647_v52 = vpop.permute.xlu1 %651 }
 0x235   :  { %391 = vmatpush.msrb.mxu0 %v1332_v41  ;;  %1308 = vmatpush.msra.mxu1 %v1332_v41 }
 0x236   :  { %1309 = vmatpush.msra.mxu2 %v1332_v41  ;;  %1310 = vmatpush.msra.mxu3 %v1332_v41 }
 0x237   :  { %1234 = vmatmul.msk.f32.vlgmr.msra.gmra.mxu1 %vm174_vm1, %v223_v44  ;;  %1249 = vmatmul.msk.f32.vlgmr.msra.gmra.mxu2 %vm174_vm1, %v238_v45 }
 0x238   :  { %1254 = vmatmul.msk.f32.vlgmr.msra.gmra.mxu3 %vm174_vm1, %v243_v46  ;;  %1263 = vmatpush.xpose.msk.msrb.mxu2 %vm617_vm2, %v616_v43  ;;  %v501_v43 = vld [vmem:[%s2182_s4] sm:$0xff] }
 0x239   :  { %1267 = vmatpush.xpose.msk.msrb.mxu3 %vm617_vm2, %v656_v36  ;;  %962 = vmatpush.msra.mxu0 %v1331_v40  ;;  %v508_v40 = vld [vmem:[%s2182_s4 + $0x38] sm:$0xff]  ;;  %v1347_v46 = vld [vmem:[%s2183_s5] ss:$0 sm:$0xff] }
 0x23a   :  { %1227 = vmatmul.msk.f32.vlgmr.msrb.gmra.mxu0 %vm174_vm1, %v216_v47 }
 0x23b   :  { %963 = vmatpush.msra.mxu0 %v1332_v41 }
 0x23c   :  { %v614_v48 = vpop.permute.xlu0 %613  ;;  %v689_v58 = vpop.permute.xlu1 %688 }
 0x23d   :  { %1268 = vmatpush.xpose.msk.msrb.mxu3 %vm617_vm2, %v654_v42  ;;  %1264 = vmatpush.xpose.msk.msrb.mxu2 %vm617_vm2, %v614_v48  ;;  %v504_v42 = vld [vmem:[%s2182_s4 + $0x18] sm:$0xff] }
 0x23f   :  { %1235 = vmatmul.msk.f32.gmra.mxu1 %vm174_vm1, %v224_v49  ;;  %1250 = vmatmul.msk.f32.gmra.mxu2 %vm174_vm1, %v239_v50 }
 0x240   :  { %1255 = vmatmul.msk.f32.gmra.mxu3 %vm174_vm1, %v244_v51 }
 0x242   :  { %1228 = vmatmul.msk.f32.gmra.mxu0 %vm174_vm1, %v217_v53  ;;  %v509_v53 = vld [vmem:[%s2182_s4 + $0x40] sm:$0xff] }
 0x244   :  { %v691_v54 = vpop.permute.xlu0 %690  ;;  %v724_v20 = vpop.permute.xlu1 %723 }
 0x245   :  { %1271 = vmatpush.xpose.msk.msra.mxu2 %vm617_vm2, %v691_v54 }
 0x247   :  { %1236 = vmatmul.msk.f32.gmra.mxu1 %vm174_vm1, %v225_v55  ;;  %1251 = vmatmul.msk.f32.gmra.mxu2 %vm174_vm1, %v240_v56  ;;  %v502_v56 = vld [vmem:[%s2182_s4 + $0x8] sm:$0xff] }
 0x248   :  { %1256 = vmatmul.msk.f32.gmra.mxu3 %vm174_vm1, %v245_v57 }
 0x249   :  { %1272 = vmatpush.xpose.msk.msra.mxu2 %vm617_vm2, %v689_v58  ;;  %v505_v58 = vld [vmem:[%s2182_s4 + $0x20] sm:$0xff] }
 0x24a   :  { %1229 = vmatmul.msk.f32.gmra.mxu0 %vm174_vm1, %v218_v59 }
 0x24c   :  { %v730_v60 = vpop.permute.xlu0 %729 }
 0x24d   :  { %1275 = vmatpush.xpose.msk.msra.mxu3 %vm617_vm2, %v730_v60 }
 0x24f   :  { %1237 = vmatmul.msk.f32.gmra.mxu1 %vm174_vm1, %v226_v61  ;;  %1252 = vmatmul.msk.f32.gmra.mxu2 %vm174_vm1, %v241_v62  ;;  %v513_v61 = vld [vmem:[%s2182_s4 + $0x60] sm:$0xff] }
 0x250   :  { %1257 = vmatmul.msk.f32.gmra.mxu3 %vm174_vm1, %v246_v63 }
 0x252   :  { %1230 = vmatmul.msk.f32.gmra.mxu0 %vm174_vm1, %v219_v0 }
 0x254   :  { %v728_v1 = vpop.permute.xlu0 %727 }
 0x255   :  { %1276 = vmatpush.xpose.msk.msra.mxu3 %vm617_vm2, %v728_v1 }
 0x257   :  { %1238 = vmatmul.msk.f32.gmra.mxu1 %vm174_vm1, %v227_v2  ;;  %1253 = vmatmul.msk.f32.gmra.mxu2 %vm174_vm1, %v242_v3  ;;  %v510_v3 = vld [vmem:[%s2182_s4 + $0x48] sm:$0xff] }
 0x258   :  { %1258 = vmatmul.msk.f32.gmra.mxu3 %vm174_vm1, %v247_v4 }
 0x25a   :  { %1231 = vmatmul.msk.f32.gmra.mxu0 %vm174_vm1, %v220_v5 }
 0x25c   :  { %v726_v22 = vpop.permute.xlu0 %725 }
 0x25f   :  { %1239 = vmatmul.msk.f32.gmra.mxu1 %vm174_vm1, %v228_v6  ;;  %1265 = vmatmul.msk.f32.vlgmr.msrb.gmra.mxu2 %vm617_vm2, %v1578_v26  ;;  %v503_v6 = vld [vmem:[%s2182_s4 + $0x10] sm:$0xff] }
 0x260   :  { %1259 = vmatmul.msk.f32.gmra.mxu3 %vm174_vm1, %v248_v7 }
 0x262   :  { %1232 = vmatmul.msk.f32.gmra.mxu0 %vm174_vm1, %v221_v8 }
 0x267   :  { %1240 = vmatmul.msk.f32.gmra.mxu1 %vm174_vm1, %v229_v9  ;;  %1266 = vmatmul.msk.f32.gmra.mxu2 %vm617_vm2, %v1581_v28  ;;  %v506_v9 = vld [vmem:[%s2182_s4 + $0x28] sm:$0xff] }
 0x268   :  { %1260 = vmatmul.msk.f32.gmra.mxu3 %vm174_vm1, %v249_v10 }
 0x26a   :  { %1233 = vmatmul.msk.f32.gmra.mxu0 %vm174_vm1, %v222_v11 }
 0x26f   :  { %1241 = vmatmul.msk.f32.gmra.mxu1 %vm174_vm1, %v230_v12  ;;  %1273 = vmatmul.msk.f32.vlgmr.msra.gmra.mxu2 %vm617_vm2, %v1586_v32 }
 0x270   :  { %1261 = vmatmul.msk.f32.gmra.mxu3 %vm174_vm1, %v250_v13  ;;  %v514_v13 = vld [vmem:[%s2182_s4 + $0x68] sm:$0xff] }
 0x277   :  { %1242 = vmatmul.msk.f32.gmra.mxu1 %vm174_vm1, %v231_v14  ;;  %1274 = vmatmul.msk.f32.gmra.mxu2 %vm617_vm2, %v1588_v33 }
 0x278   :  { %1262 = vmatmul.msk.f32.gmra.mxu3 %vm174_vm1, %v251_v15 }
 0x27f   :  { %1243 = vmatmul.msk.f32.gmra.mxu1 %vm174_vm1, %v232_v16 }
 0x280   :  { %1269 = vmatmul.msk.f32.vlgmr.msrb.gmra.mxu3 %vm617_vm2, %v650_v17 }
 0x281   :  { %1036 = vmatpush.msrb.mxu3 %v1606_v38 }
 0x283   :  { %1037 = vmatpush.msrb.mxu3 %v1608_v39 }
 0x287   :  { %1244 = vmatmul.msk.f32.gmra.mxu1 %vm174_vm1, %v233_v18 }
 0x288   :  { %1270 = vmatmul.msk.f32.gmra.mxu3 %vm617_vm2, %v1647_v52 }
 0x28f   :  { %1245 = vmatmul.msk.f32.gmra.mxu1 %vm174_vm1, %v234_v19  ;;  %v511_v19 = vld [vmem:[%s2182_s4 + $0x50] sm:$0xff] }
 0x290   :  { %1277 = vmatmul.msk.f32.vlgmr.msra.gmra.mxu3 %vm617_vm2, %v724_v20 }
 0x297   :  { %1246 = vmatmul.msk.f32.gmra.mxu1 %vm174_vm1, %v235_v21 }
 0x298   :  { %1278 = vmatmul.msk.f32.gmra.mxu3 %vm617_vm2, %v726_v22 }
 0x29f   :  { %1247 = vmatmul.msk.f32.gmra.mxu1 %vm174_vm1, %v236_v23 }
 0x2a7   :  { %1248 = vmatmul.msk.f32.gmra.mxu1 %vm174_vm1, %v237_v24  ;;  %v507_v24 = vld [vmem:[%s2182_s4 + $0x30] sm:$0xff] }
 0x2b4   :  { %v414_v25 = vpop.f32.mrf.mxu1 }
 0x2b5   :  { %v544_v45 = vmul.f32 %v508_v40, %v414_v25 }
 0x2b7   :  { %v393_v27 = vpop.f32.mrf.mxu0 }
 0x2b8   :  { %v537_v48 = vmul.f32 %v501_v43, %v393_v27 }
 0x2ba   :  { %v1789_v34 = vpop.f32.mrf.mxu2  ;;  %v577_v54 = vadd.f32 %v1347_v46, %v537_v48  ;;  %v1870_v48 = vstv %s1212_s20  ;;  %s1217_s20 = sld [smem:[#allocation6 + $0x81]] }
 0x2bb   :  { %v1787_v29 = vpop.f32.mrf.mxu3 }
 0x2bc   :  { %v417_v30 = vpop.f32.mrf.mxu1 }
 0x2bd   :  { %v545_v59 = vmul.f32 %v509_v53, %v417_v30 }
 0x2bf   :  { %v396_v31 = vpop.f32.mrf.mxu0 }
 0x2c0   :  { %v538_v62 = vmul.f32 %v502_v56, %v396_v31  ;;  %v764_v56 = vld [vmem:[%s2184_s6 + $0x10] sm:$0xff] }
 0x2c2   :  { %v1798_v41 = vpop.f32.mrf.mxu2  ;;  %v578_v5 = vadd.f32 %v1347_v46, %v538_v62  ;;  %v1886_v62 = vstv %s1213_s9 }
 0x2c3   :  { %v1791_v35 = vpop.f32.mrf.mxu3 }
 0x2c4   :  { %v420_v36 = vpop.f32.mrf.mxu1 }
 0x2c5   :  { %v546_v10 = vmul.f32 %v510_v3, %v420_v36 }
 0x2c7   :  { %v399_v37 = vpop.f32.mrf.mxu0 }
 0x2c8   :  { %v539_v14 = vmul.f32 %v503_v6, %v399_v37 }
 0x2ca   :  { %v1818_v55 = vpop.f32.mrf.mxu2  ;;  %v579_v21 = vadd.f32 %v1347_v46, %v539_v14 }
 0x2cb   :  { %v1793_v38 = vpop.f32.mrf.mxu3 }
 0x2cc   :  { %v423_v39 = vpop.f32.mrf.mxu1 }
 0x2cd   :  { %v547_v25 = vmul.f32 %v511_v19, %v423_v39  ;;  %v762_v39 = vld [vmem:[%s2184_s6] sm:$0xff] }
 0x2cf   :  { %v402_v44 = vpop.f32.mrf.mxu0 }
 0x2d0   :  { %v540_v47 = vmul.f32 %v504_v42, %v402_v44 }
 0x2d2   :  { %v580_v49 = vadd.f32 %v1347_v46, %v540_v47  ;;  %v1842_v12 = vpop.f32.mrf.mxu2 }
 0x2d3   :  { %v1809_v50 = vpop.f32.mrf.mxu3 }
 0x2d4   :  { %v1811_v51 = vpop.f32.mrf.mxu1  ;;  %v1813_v52 = vadd.f32 %v580_v49, %v544_v45  ;;  %v1872_v49 = vstv %s92_s8 }
 0x2d7   :  { %v405_v57 = vpop.f32.mrf.mxu0 }
 0x2d8   :  { %v541_v60 = vmul.f32 %v505_v58, %v405_v57  ;;  %v1879_v58 = vstv %s1214_s21 }
 0x2da   :  { %v581_v63 = vadd.f32 %v577_v54, %v541_v60  ;;  %v1857_v31 = vpop.f32.mrf.mxu2 }
 0x2db   :  { %v1829_v0 = vpop.f32.mrf.mxu3 }
 0x2dc   :  { %v429_v1 = vpop.f32.mrf.mxu1  ;;  %v585_v2 = vadd.f32 %v581_v63, %v545_v59  ;;  %v763_v59 = vld [vmem:[%s2184_s6 + $0x8] sm:$0xff]  ;;  %v1888_v63 = vstv %s96_s22 }
 0x2dd   :  { %v549_v4 = vmul.f32 %v513_v61, %v429_v1  ;;  %v1884_v61 = vstv %s1211_s1  ;;  %v515_v1 = vld [vmem:[%s2182_s4 + $0x70] sm:$0xff] }
 0x2df   :  { %v1837_v7 = vadd.f32 %v585_v2, %v549_v4  ;;  %v408_v8 = vpop.f32.mrf.mxu0 }
 0x2e0   :  { %v542_v11 = vmul.f32 %v506_v9, %v408_v8 }
 0x2e2   :  { %v582_v15 = vadd.f32 %v578_v5, %v542_v11  ;;  %v643_v44 = vpop.f32.mrf.mxu2  ;;  %v512_v11 = vld [vmem:[%s2182_s4 + $0x58] sm:$0xff] }
 0x2e3   :  { %v1847_v16 = vpop.f32.mrf.mxu3  ;;  %v770_v47 = vadd.f32 %v762_v39, %v643_v44  ;;  %v516_v44 = vld [vmem:[%s2182_s4 + $0x78] sm:$0xff] }
 0x2e4   :  { %v432_v17 = vpop.f32.mrf.mxu1  ;;  %v586_v18 = vadd.f32 %v582_v15, %v546_v10 }
 0x2e5   :  { %v550_v20 = vmul.f32 %v514_v13, %v432_v17  ;;  %v790_v54 = vmul.f32 %v1870_v48, %v770_v47  ;;  %v779_v57 = vmul.f32 %v1872_v49, %v770_v47  ;;  %v765_v17 = vld [vmem:[%s2184_s6 + $0x18] sm:$0xff] }
 0x2e7   :  { %v1852_v22 = vadd.f32 %v586_v18, %v550_v20  ;;  %v411_v23 = vpop.f32.mrf.mxu0  ;;  %v793_v4 = vadd.f32 %v1879_v58, %v790_v54  ;;  %v782_v9 = vadd.f32 %v1888_v63, %v779_v57  ;;  %v766_v20 = vld [vmem:[%s2184_s6 + $0x20] sm:$0xff] }
 0x2e8   :  { %v543_v27 = vmul.f32 %v507_v24, %v411_v23  ;;  %v519_v24 = vld [vmem:[%s2182_s4 + $0x90] sm:$0xff] }
 0x2ea   :  { %v583_v30 = vadd.f32 %v579_v21, %v543_v27  ;;  %v646_v53 = vpop.f32.mrf.mxu2 }
 0x2eb   :  { %v1859_v36 = vpop.f32.mrf.mxu3  ;;  %v771_v5 = vadd.f32 %v763_v59, %v646_v53 }
 0x2ec   :  { %v435_v37 = vpop.f32.mrf.mxu1  ;;  %v587_v40 = vadd.f32 %v583_v30, %v547_v25  ;;  %v548_v25 = vmul.f32 %v512_v11, %v1811_v51  ;;  %v527_v51 = vld [vmem:[%s2182_s4 + $0xd0] sm:$0xff] }
 0x2ed   :  { %v551_v10 = vmul.f32 %v515_v1, %v435_v37  ;;  %v780_v18 = vmul.f32 %v1872_v49, %v771_v5  ;;  %v791_v19 = vmul.f32 %v1870_v48, %v771_v5  ;;  %v523_v37 = vld [vmem:[%s2182_s4 + $0xb0] sm:$0xff] }
 0x2ee   :  { %v531_v5 = vld [vmem:[%s2182_s4 + $0xf0] sm:$0xff] }
 0x2ef   :  { %v591_v30 = vadd.f32 %v587_v40, %v551_v10  ;;  %v794_v57 = vadd.f32 %v1879_v58, %v791_v19  ;;  %v783_v59 = vadd.f32 %v1888_v63, %v780_v18  ;;  %v567_v18 = vmul.f32 %v531_v5, %v1809_v50 }
 0x2f2   :  { %v717_v15 = vpop.f32.mrf.mxu2 }
 0x2f3   :  { %v1861_v42 = vpop.f32.mrf.mxu3  ;;  %v774_v53 = vadd.f32 %v766_v20, %v717_v15 }
 0x2f4   :  { %v438_v43 = vpop.f32.mrf.mxu1 }
 0x2f5   :  { %v552_v1 = vmul.f32 %v516_v44, %v438_v43  ;;  %v808_v10 = vmul.f32 %v1870_v48, %v774_v53  ;;  %v800_v43 = vmul.f32 %v1872_v49, %v774_v53  ;;  %v528_v53 = vld [vmem:[%s2182_s4 + $0xd8] sm:$0xff] }
 0x2f6   :  { %v564_v5 = vmul.f32 %v528_v53, %v1787_v29  ;;  %v521_v29 = vld [vmem:[%s2182_s4 + $0xa0] sm:$0xff] }
 0x2fa   :  { %v720_v20 = vpop.f32.mrf.mxu2 }
 0x2fb   :  { %v1866_v45 = vpop.f32.mrf.mxu3 }
 0x2fc   :  { %v1868_v46 = vpop.f32.mrf.mxu1 }
 0x303   :  { %v682_v60 = vpop.f32.mrf.mxu3 }
 0x304   :  { %v772_v2 = vadd.f32 %v764_v56, %v682_v60  ;;  %v1893_v3 = vpop.f32.mrf.mxu1  ;;  %v559_v60 = vmul.f32 %v523_v37, %v1789_v34  ;;  %v768_v34 = vld [vmem:[%s2184_s6 + $0x30] sm:$0xff] }
 0x306   :  { %v785_v6 = vmul.f32 %v1884_v61, %v772_v2  ;;  %v796_v8 = vmul.f32 %v1886_v62, %v772_v2  ;;  %v588_v2 = vadd.f32 %v1813_v52, %v548_v25  ;;  %v535_v52 = vld [vmem:[%s2182_s4 + $0x110] sm:$0xff]  ;;  %v524_v25 = vld [vmem:[%s2182_s4 + $0xb8] sm:$0xff] }
 0x307   :  { %v571_v37 = vmul.f32 %v535_v52, %v1861_v42 }
 0x308   :  { %v1902_v13 = vadd.f32 %v796_v8, %v793_v4  ;;  %v1904_v14 = vadd.f32 %v785_v6, %v782_v9  ;;  %v563_v9 = vmul.f32 %v527_v51, %v1857_v31  ;;  %v520_v31 = vld [vmem:[%s2182_s4 + $0x98] sm:$0xff]  ;;  %v592_v19 = vadd.f32 %v588_v2, %v552_v1 }
 0x309   :  { %v532_v1 = vld [vmem:[%s2182_s4 + $0xf8] sm:$0xff] }
 0x30a   :  { %v822_v21 = vsel %vm129_vm0, %v1902_v13, -inf  ;;  %v816_v23 = vsel %vm129_vm0, %v1904_v14, -inf }
 0x30b   :  { %v685_v27 = vpop.f32.mrf.mxu3  ;;  %823 = vmax.xlane.f32.xlu0 %v822_v21  ;;  %817 = vmax.xlane.f32.xlu1 %v816_v23  ;;  %v767_v21 = vld [vmem:[%s2184_s6 + $0x28] sm:$0xff] }
 0x30c   :  { %v773_v39 = vadd.f32 %v765_v17, %v685_v27  ;;  %v447_v47 = vpop.f32.mrf.mxu1  ;;  %v517_v27 = vld [vmem:[%s2182_s4 + $0x80] sm:$0xff] }
 0x30d   :  { %v555_v54 = vmul.f32 %v519_v24, %v447_v47 }
 0x30e   :  { %v786_v56 = vmul.f32 %v1884_v61, %v773_v39  ;;  %v797_v40 = vmul.f32 %v1886_v62, %v773_v39  ;;  %v810_v39 = vadd.f32 %v808_v10, %v1879_v58 }
 0x30f   :  { %v595_v4 = vadd.f32 %v591_v30, %v555_v54  ;;  %v775_v54 = vadd.f32 %v767_v21, %v720_v20 }
 0x310   :  { %v1940_v6 = vadd.f32 %v797_v40, %v794_v57  ;;  %v1942_v8 = vadd.f32 %v786_v56, %v783_v59  ;;  %v802_v40 = vadd.f32 %v800_v43, %v1888_v63  ;;  %v560_v57 = vmul.f32 %v524_v25, %v1798_v41  ;;  %v769_v41 = vld [vmem:[%s2184_s6 + $0x38] sm:$0xff] }
 0x311   :  { %v599_v11 = vadd.f32 %v595_v4, %v559_v60  ;;  %v553_v59 = vmul.f32 %v517_v27, %v1868_v46  ;;  %v536_v46 = vld [vmem:[%s2182_s4 + $0x118] sm:$0xff]  ;;  %v801_v10 = vmul.f32 %v1872_v49, %v775_v54  ;;  %v568_v43 = vmul.f32 %v532_v1, %v1829_v0  ;;  %v518_v49 = vld [vmem:[%s2182_s4 + $0x88] sm:$0xff] }
 0x312   :  { %v825_v15 = vsel %vm129_vm0, %v1940_v6, -inf  ;;  %v819_v17 = vsel %vm129_vm0, %v1942_v8, -inf  ;;  %v572_v20 = vmul.f32 %v536_v46, %v1866_v45 }
 0x313   :  { %v603_v23 = vadd.f32 %v599_v11, %v563_v9  ;;  %v756_v24 = vpop.f32.mrf.mxu3  ;;  %826 = vmax.xlane.f32.xlu0 %v825_v15  ;;  %820 = vmax.xlane.f32.xlu1 %v819_v17  ;;  %v809_v11 = vmul.f32 %v1870_v48, %v775_v54  ;;  %v593_v15 = vadd.f32 %v1837_v7, %v553_v59  ;;  %v525_v48 = vld [vmem:[%s2182_s4 + $0xc0] sm:$0xff] }
 0x314   :  { %v776_v30 = vadd.f32 %v768_v34, %v756_v24  ;;  %v450_v50 = vpop.f32.mrf.mxu1  ;;  %v529_v7 = vld [vmem:[%s2182_s4 + $0xe0] sm:$0xff]  ;;  %v803_v27 = vadd.f32 %v801_v10, %v1888_v63 }
 0x315   :  { %v556_v44 = vmul.f32 %v520_v31, %v450_v50  ;;  %v607_v47 = vadd.f32 %v603_v23, %v567_v18  ;;  %v811_v25 = vadd.f32 %v809_v11, %v1879_v58  ;;  %v554_v50 = vmul.f32 %v518_v49, %v1893_v3  ;;  %v522_v3 = vld [vmem:[%s2182_s4 + $0xa8] sm:$0xff] }
 0x316   :  { %v804_v51 = vmul.f32 %v1884_v61, %v776_v30  ;;  %v812_v56 = vmul.f32 %v1886_v62, %v776_v30  ;;  %v561_v30 = vmul.f32 %v525_v48, %v1818_v55 }
 0x317   :  { %v596_v42 = vadd.f32 %v592_v19, %v556_v44  ;;  %v1980_v60 = vadd.f32 %v607_v47, %v571_v37  ;;  %v533_v44 = vld [vmem:[%s2182_s4 + $0x100] sm:$0xff]  ;;  %v594_v53 = vadd.f32 %v1852_v22, %v554_v50  ;;  %v534_v22 = vld [vmem:[%s2182_s4 + $0x108] sm:$0xff] }
 0x318   :  { %v1985_v2 = vadd.f32 %v812_v56, %v810_v39  ;;  %v1987_v4 = vadd.f32 %v804_v51, %v802_v40  ;;  %v569_v47 = vmul.f32 %v533_v44, %v1847_v16 }
 0x319   :  { %v600_v9 = vadd.f32 %v596_v42, %v560_v57  ;;  %v530_v57 = vld [vmem:[%s2182_s4 + $0xe8] sm:$0xff] }
 0x31a   :  { %v834_v34 = vsel %vm129_vm0, %v1985_v2, -inf  ;;  %v828_v52 = vsel %vm129_vm0, %v1987_v4, -inf  ;;  %v566_v42 = vmul.f32 %v530_v57, %v1793_v38 }
 0x31b   :  { %v604_v17 = vadd.f32 %v600_v9, %v564_v5  ;;  %v759_v31 = vpop.f32.mrf.mxu3  ;;  %835 = vmax.xlane.f32.xlu0 %v834_v34  ;;  %829 = vmax.xlane.f32.xlu1 %v828_v52  ;;  %v570_v5 = vmul.f32 %v534_v22, %v1859_v36 }
 0x31c   :  { %v777_v18 = vadd.f32 %v769_v41, %v759_v31  ;;  %v453_v19 = vpop.f32.mrf.mxu1 }
 0x31d   :  { %v557_v21 = vmul.f32 %v521_v29, %v453_v19  ;;  %v608_v0 = vadd.f32 %v604_v17, %v568_v43 }
 0x31e   :  { %v805_v23 = vmul.f32 %v1884_v61, %v777_v18  ;;  %v813_v24 = vmul.f32 %v1886_v62, %v777_v18  ;;  %v565_v62 = vmul.f32 %v529_v7, %v1791_v35  ;;  %v526_v35 = vld [vmem:[%s2182_s4 + $0xc8] sm:$0xff]  ;;  %s1443_s4 = smov 80  }
 0x31f   :  { %v597_v37 = vadd.f32 %v593_v15, %v557_v21  ;;  %v2023_v45 = vadd.f32 %v608_v0, %v572_v20  ;;  %v562_v59 = vmul.f32 %v526_v35, %v1842_v12 }
 0x320   :  { %v2028_v39 = vadd.f32 %v813_v24, %v811_v25  ;;  %v2030_v61 = vadd.f32 %v805_v23, %v803_v27 }
 0x321   :  { %v601_v58 = vadd.f32 %v597_v37, %v561_v30 }
 0x322   :  { %v837_v63 = vsel %vm129_vm0, %v2028_v39, -inf  ;;  %v831_v55 = vsel %vm129_vm0, %v2030_v61, -inf }
 0x323   :  { %v605_v54 = vadd.f32 %v601_v58, %v565_v62  ;;  %838 = vmax.xlane.f32.xlu0 %v837_v63  ;;  %832 = vmax.xlane.f32.xlu1 %v831_v55  ;;  %v1333_v55 = vpack.i.bf16 %v1581_v28, %v1588_v33 }
 0x324   :  { %v456_v51 = vpop.f32.mrf.mxu1 }
 0x325   :  { %v558_v56 = vmul.f32 %v522_v3, %v456_v51  ;;  %v2045_v40 = vadd.f32 %v605_v54, %v569_v47  ;;  %v1338_v3 = vpack.i.bf16 %v1578_v26, %v1586_v32  ;;  %v904_v51 = vstv %s98_s16 }
 0x327   :  { %v598_v16 = vadd.f32 %v594_v53, %v558_v56 }
 0x329   :  { %v602_v1 = vadd.f32 %v598_v16, %v562_v59  ;;  %v910_v59 = vstv %s1215_s17  ;;  %v907_v16 = vstv %s102_s18 }
 0x32b   :  { %v606_v9 = vadd.f32 %v602_v1, %v566_v42 }
 0x32d   :  { %v2056_v41 = vadd.f32 %v606_v9, %v570_v5 }
 0x37e   :  { %v824_v46 = vpop.xlane.xlu0 %823  ;;  %v818_v10 = vpop.xlane.xlu1 %817 }
 0x37f   :  { %v842_v11 = vsub.f32 %v1902_v13, %v824_v46  ;;  %v840_v34 = vsub.f32 %v1904_v14, %v818_v10 }
 0x381   :  { %v852_v12 = vmul.f32 1.442695, %v842_v11  ;;  %v848_v52 = vmul.f32 1.442695, %v840_v34 }
 0x383   :  { %1348 = vpow2.f32 %v852_v12 }
 0x384   :  { %1350 = vpow2.f32 %v848_v52 }
 0x386   :  { %v827_v29 = vpop.xlane.xlu0 %826  ;;  %v821_v43 = vpop.xlane.xlu1 %820 }
 0x387   :  { %v843_v38 = vsub.f32 %v1940_v6, %v827_v29  ;;  %v841_v15 = vsub.f32 %v1942_v8, %v821_v43 }
 0x389   :  { %v1349_v36 = vpop.eup %1348  ;;  %v854_v17 = vmul.f32 1.442695, %v843_v38  ;;  %v850_v31 = vmul.f32 1.442695, %v841_v15 }
 0x38a   :  { %v1351_v48 = vpop.eup %1350  ;;  %v870_v49 = vsel %vm129_vm0, %v1349_v36, 0.0 }
 0x38b   :  { %1352 = vpow2.f32 %v854_v17  ;;  %871 = vadd.xlane.f32.xlu2 %v870_v49  ;;  %v864_v13 = vsel %vm129_vm0, %v1351_v48, 0.0 }
 0x38c   :  { %1354 = vpow2.f32 %v850_v31  ;;  %865 = vadd.xlane.f32.xlu1 %v864_v13 }
 0x38e   :  { %v836_v14 = vpop.xlane.xlu0 %835  ;;  %v830_v18 = vpop.xlane.xlu1 %829 }
 0x38f   :  { %v846_v19 = vsub.f32 %v1985_v2, %v836_v14  ;;  %v844_v6 = vsub.f32 %v1987_v4, %v830_v18 }
 0x391   :  { %v2066_v20 = vpop.eup %1352  ;;  %v860_v8 = vmul.f32 1.442695, %v846_v19  ;;  %v856_v21 = vmul.f32 1.442695, %v844_v6 }
 0x392   :  { %v1355_v0 = vpop.eup %1354  ;;  %v873_v7 = vsel %vm129_vm0, %v2066_v20, 0.0 }
 0x393   :  { %1356 = vpow2.f32 %v860_v8  ;;  %v867_v23 = vsel %vm129_vm0, %v1355_v0, 0.0 }
 0x394   :  { %1358 = vpow2.f32 %v856_v21  ;;  %874 = vadd.xlane.f32.xlu1 %v873_v7  ;;  %868 = vadd.xlane.f32.xlu0 %v867_v23  ;;  %v915_v23 = vstv %s1216_s3 }
 0x396   :  { %v839_v24 = vpop.xlane.xlu0 %838  ;;  %v833_v25 = vpop.xlane.xlu1 %832 }
 0x397   :  { %v847_v2 = vsub.f32 %v2028_v39, %v839_v24  ;;  %v845_v4 = vsub.f32 %v2030_v61, %v833_v25 }
 0x399   :  { %v1357_v27 = vpop.eup %1356  ;;  %v862_v30 = vmul.f32 1.442695, %v847_v2  ;;  %v858_v50 = vmul.f32 1.442695, %v845_v4  ;;  %v918_v2 = vstv %s1218_s19 }
 0x39a   :  { %v1359_v37 = vpop.eup %1358  ;;  %v882_v44 = vsel %vm129_vm0, %v1357_v27, 0.0 }
 0x39b   :  { %1360 = vpow2.f32 %v862_v30  ;;  %v876_v62 = vsel %vm129_vm0, %v1359_v37, 0.0 }
 0x39c   :  { %1362 = vpow2.f32 %v858_v50  ;;  %883 = vadd.xlane.f32.xlu1 %v882_v44  ;;  %877 = vadd.xlane.f32.xlu0 %v876_v62  ;;  %v921_v50 = vstv %s1217_s20 }
 0x3a1   :  { %v2075_v58 = vpop.eup %1360 }
 0x3a2   :  { %v1363_v63 = vpop.eup %1362  ;;  %v885_v39 = vsel %vm129_vm0, %v2075_v58, 0.0 }
 0x3a3   :  { %v879_v61 = vsel %vm129_vm0, %v1363_v63, 0.0 }
 0x3a4   :  { %886 = vadd.xlane.f32.xlu1 %v885_v39  ;;  %880 = vadd.xlane.f32.xlu0 %v879_v61 }
 0x3b8   :  { %1334 = vrot.lane.b32.xlu0 %v1333_v55, %s1443_s4 }
 0x3bd   :  { %1339 = vrot.lane.b32.xlu1 %v1338_v3, %s1443_s4 }
 0x3fe   :  { %v872_v47 = vpop.xlane.xlu2 %871 }
 0x3ff   :  { %1364 = vrcp.f32 %v872_v47  ;;  %v866_v53 = vpop.xlane.xlu1 %865 }
 0x400   :  { %1366 = vrcp.f32 %v866_v53 }
 0x405   :  { %v1365_v54 = vpop.eup %1364 }
 0x406   :  { %v1367_v35 = vpop.eup %1366  ;;  %v2084_v56 = vmul.f32 %v1365_v54, %v1349_v36 }
 0x407   :  { %v896_v57 = vmul.f32 %v1367_v35, %v1351_v48  ;;  %v869_v28 = vpop.xlane.xlu0 %868  ;;  %v875_v33 = vpop.xlane.xlu1 %874 }
 0x408   :  { %1368 = vrcp.f32 %v869_v28  ;;  %v911_v32 = vmul.f32 %v910_v59, %v2084_v56  ;;  %v922_v62 = vmul.f32 %v921_v50, %v2084_v56 }
 0x409   :  { %v905_v26 = vmul.f32 %v904_v51, %v896_v57  ;;  %1370 = vrcp.f32 %v875_v33  ;;  %v916_v24 = vmul.f32 %v915_v23, %v896_v57 }
 0x40b   :  { %v908_v22 = vadd.f32 %v907_v16, %v905_v26 }
 0x40d   :  { %v913_v42 = vadd.f32 %v911_v32, %v908_v22 }
 0x40e   :  { %v1369_v1 = vpop.eup %1368 }
 0x40f   :  { %v1371_v5 = vpop.eup %1370  ;;  %v897_v9 = vmul.f32 %v1369_v1, %v1355_v0  ;;  %v878_v46 = vpop.xlane.xlu0 %877  ;;  %1279 = vmatmul.msk.f32.vlgmr.msra.gmra.mxu0 %vm129_vm0, %v913_v42 }
 0x410   :  { %v884_v10 = vpop.xlane.xlu1 %883  ;;  %v899_v11 = vmul.f32 %v1371_v5, %v2066_v20  ;;  %1372 = vrcp.f32 %v878_v46 }
 0x411   :  { %1374 = vrcp.f32 %v884_v10  ;;  %v906_v34 = vmul.f32 %v904_v51, %v897_v9  ;;  %v917_v47 = vmul.f32 %v915_v23, %v897_v9 }
 0x412   :  { %v912_v52 = vmul.f32 %v910_v59, %v899_v11 }
 0x413   :  { %v909_v12 = vadd.f32 %v907_v16, %v906_v34  ;;  %v920_v54 = vadd.f32 %v918_v2, %v917_v47 }
 0x415   :  { %v914_v29 = vadd.f32 %v912_v52, %v909_v12 }
 0x416   :  { %v1373_v43 = vpop.eup %1372 }
 0x417   :  { %v1375_v38 = vpop.eup %1374  ;;  %v900_v15 = vmul.f32 %v1373_v43, %v1359_v37  ;;  %v881_v36 = vpop.xlane.xlu0 %880  ;;  %1280 = vmatmul.msk.f32.gmra.mxu0 %vm129_vm0, %v914_v29  ;;  %v919_v37 = vadd.f32 %v918_v2, %v916_v24  ;;  %v1444_v29 = vmov 0   ;;  %v1102_v43 = vld [vmem:[%s2190_s12] sm:$0xff] }
 0x418   :  { %v887_v17 = vpop.xlane.xlu1 %886  ;;  %v902_v31 = vmul.f32 %v1375_v38, %v1357_v27  ;;  %1376 = vrcp.f32 %v881_v36  ;;  %1343 = vset.pattern.permute.xlu1 %v1444_v29  ;;  %1344 = vset.pattern.permute.xlu0 %v1444_v29 }
 0x419   :  { %v926_v48 = vmul.f32 %v904_v51, %v900_v15  ;;  %1378 = vrcp.f32 %v887_v17  ;;  %v934_v25 = vmul.f32 %v915_v23, %v900_v15  ;;  %v924_v3 = vadd.f32 %v922_v62, %v919_v37  ;;  %1345 = vset.pattern.permute.xlu2 %v1444_v29 }
 0x41a   :  { %v930_v13 = vmul.f32 %v910_v59, %v902_v31 }
 0x41b   :  { %v928_v49 = vadd.f32 %v926_v48, %v907_v16  ;;  %v936_v44 = vadd.f32 %v934_v25, %v918_v2 }
 0x41d   :  { %v932_v14 = vadd.f32 %v930_v13, %v928_v49  ;;  %v1105_v49 = vld [vmem:[%s2190_s12 + $0x18] sm:$0xff]  ;;  %v1104_v13 = vld [vmem:[%s2190_s12 + $0x10] sm:$0xff] }
 0x41e   :  { %v1377_v18 = vpop.eup %1376 }
 0x41f   :  { %v1379_v19 = vpop.eup %1378  ;;  %v901_v6 = vmul.f32 %v1377_v18, %v1363_v63  ;;  %1283 = vmatmul.msk.f32.vlgmr.msrb.gmra.mxu3 %vm129_vm0, %v932_v14  ;;  %v1100_v18 = vld [vmem:[%s2189_s11 + $0x10] sm:$0xff] }
 0x420   :  { %v903_v20 = vmul.f32 %v1379_v19, %v2075_v58  ;;  %v938_v58 = vmul.f32 %v921_v50, %v902_v31  ;;  %v1101_v19 = vld [vmem:[%s2189_s11 + $0x18] sm:$0xff] }
 0x421   :  { %v927_v8 = vmul.f32 %v904_v51, %v901_v6  ;;  %v935_v53 = vmul.f32 %v915_v23, %v901_v6  ;;  %v923_v51 = vmul.f32 %v921_v50, %v899_v11 }
 0x422   :  { %v931_v0 = vmul.f32 %v910_v59, %v903_v20  ;;  %v940_v55 = vadd.f32 %v938_v58, %v936_v44  ;;  %v939_v57 = vmul.f32 %v921_v50, %v903_v20 }
 0x423   :  { %v929_v21 = vadd.f32 %v927_v8, %v907_v16  ;;  %v937_v35 = vadd.f32 %v935_v53, %v918_v2  ;;  %v925_v28 = vadd.f32 %v923_v51, %v920_v54 }
 0x425   :  { %v933_v7 = vadd.f32 %v931_v0, %v929_v21  ;;  %v941_v56 = vadd.f32 %v939_v57, %v937_v35 }
 0x427   :  { %1284 = vmatmul.msk.f32.gmra.mxu3 %vm129_vm0, %v933_v7 }
 0x42a   :  { %v1335_v4 = vpop.permute.xlu0 %1334 }
 0x42b   :  { %v1337_v27 = vunpack.i.h.bf16 %v1335_v4  ;;  %v1336_v30 = vunpack.i.l.bf16 %v1335_v4 }
 0x42d   :  { %997 = vmatpush.msrb.mxu2 %v1337_v27  ;;  %1071 = vmatpush.msrb.mxu0 %v1336_v30 }
 0x42f   :  { %v1340_v63 = vpop.permute.xlu1 %1339 }
 0x430   :  { %v1342_v39 = vunpack.i.h.bf16 %v1340_v63  ;;  %v1341_v61 = vunpack.i.l.bf16 %v1340_v63 }
 0x432   :  { %998 = vmatpush.msrb.mxu2 %v1342_v39  ;;  %1072 = vmatpush.msrb.mxu0 %v1341_v61 }
 0x433   :  { %1281 = vmatmul.msk.f32.vlgmr.msrb.gmra.mxu2 %vm129_vm0, %v924_v3  ;;  %1285 = vmatmul.msk.f32.vlgmr.msrb.gmra.mxu0 %vm129_vm0, %v940_v55 }
 0x43b   :  { %1282 = vmatmul.msk.f32.gmra.mxu2 %vm129_vm0, %v925_v28  ;;  %1286 = vmatmul.msk.f32.gmra.mxu0 %vm129_vm0, %v941_v56 }
 0x48c   :  { %v965_v33 = vpop.f32.mrf.mxu0 }
 0x494   :  { %v968_v59 = vpop.f32.mrf.mxu0 }
 0x4a2   :  { %v1039_v42 = vpop.f32.mrf.mxu3 }
 0x4aa   :  { %v1042_v1 = vpop.f32.mrf.mxu3 }
 0x4b0   :  { %v1074_v16 = vpop.f32.mrf.mxu0 }
 0x4b1   :  { %1082 = vrot.lane.b32.xlu0 %v1074_v16, %s1438_s10 }
 0x4b6   :  { %v1000_v26 = vpop.f32.mrf.mxu2 }
 0x4b8   :  { %v1077_v32 = vpop.f32.mrf.mxu0 }
 0x4b9   :  { %1008 = vrot.lane.b32.xlu0 %v1000_v26, %s1438_s10  ;;  %1084 = vrot.lane.b32.xlu2 %v1077_v32, %s1438_s10 }
 0x4be   :  { %v1003_v22 = vpop.f32.mrf.mxu2 }
 0x4bf   :  { %1010 = vrot.lane.b32.xlu1 %v1003_v22, %s1438_s10 }
 0x4c1   :  { %1118 = vperm.xlu2 %1345, %v1104_v13  }
 0x4c7   :  { %1108 = vperm.xlu1 %1343, %v1102_v43  }
 0x4cf   :  { %1123 = vperm.xlu1 %1343, %v1105_v49  }
 0x513   :  { %v1085_v5 = vpop.permute.xlu2 %1084 }
 0x514   :  { %v1089_v9 = vsel %vm129_vm0, %v1042_v1, %v1085_v5 }
 0x515   :  { %v1093_v46 = vadd.f32 %v1089_v9, %v2023_v45  ;;  %v1103_v45 = vld [vmem:[%s2190_s12 + $0x8] sm:$0xff] }
 0x516   :  { %1113 = vperm.xlu0 %1344, %v1103_v45  }
 0x517   :  { %v1097_v10 = vmax.f32 %v1093_v46, 0.0 }
 0x519   :  { %1287 = vmatpush.xpose.msk.msra.mxu2 %vm174_vm1, %v1097_v10 }
 0x51b   :  { %v1119_v23 = vpop.permute.xlu2 %1118 }
 0x523   :  { %v1083_v11 = vpop.permute.xlu0 %1082 }
 0x524   :  { %v1088_v34 = vsel %vm129_vm0, %v1039_v42, %v1083_v11 }
 0x525   :  { %v1092_v12 = vadd.f32 %v1088_v34, %v1980_v60 }
 0x527   :  { %v1096_v52 = vmax.f32 %v1092_v12, 0.0 }
 0x529   :  { %1288 = vmatpush.xpose.msk.msra.mxu2 %vm174_vm1, %v1096_v52 }
 0x52b   :  { %v1009_v38 = vpop.permute.xlu0 %1008 }
 0x52c   :  { %v1014_v60 = vsel %vm129_vm0, %v965_v33, %v1009_v38 }
 0x52d   :  { %v1090_v31 = vadd.f32 %v1014_v60, %v2045_v40  ;;  %v1098_v40 = vld [vmem:[%s2189_s11] sm:$0xff] }
 0x52f   :  { %v1094_v14 = vmax.f32 %v1090_v31, 0.0 }
 0x531   :  { %v1011_v15 = vpop.permute.xlu1 %1010 }
 0x532   :  { %v1015_v36 = vsel %vm129_vm0, %v968_v59, %v1011_v15 }
 0x533   :  { %v1091_v17 = vadd.f32 %v1015_v36, %v2056_v41  ;;  %v1099_v41 = vld [vmem:[%s2189_s11 + $0x8] sm:$0xff] }
 0x535   :  { %v1095_v48 = vmax.f32 %v1091_v17, 0.0 }
 0x537   :  { %1289 = vmatpush.xpose.msk.msra.mxu2 %vm174_vm1, %v1095_v48 }
 0x539   :  { %v1109_v6 = vpop.permute.xlu1 %1108 }
 0x53b   :  { %1290 = vmatpush.xpose.msk.msra.mxu2 %vm174_vm1, %v1094_v14 }
 0x53e   :  { %1291 = vmatmul.msk.f32.vlgmr.msra.gmra.mxu2 %vm174_vm1, %v1098_v40 }
 0x541   :  { %v1124_v2 = vpop.permute.xlu1 %1123 }
 0x546   :  { %1292 = vmatmul.msk.f32.gmra.mxu2 %vm174_vm1, %v1099_v41 }
 0x54e   :  { %1293 = vmatmul.msk.f32.gmra.mxu2 %vm174_vm1, %v1100_v18 }
 0x556   :  { %1294 = vmatmul.msk.f32.gmra.mxu2 %vm174_vm1, %v1101_v19 }
 0x588   :  { %v1114_v21 = vpop.permute.xlu0 %1113 }
 0x5c1   :  { %v1167_v20 = vpop.f32.mrf.mxu2 }
 0x5c2   :  { %v1168_v8 = vadd.f32 %v1167_v20, %v1109_v6 }
 0x5c4   :  { %1179 = vst.msk [vmem:[%s2191_s13] sm:$0xff] %vm129_vm0, %v1168_v8  ;;  %1187 = vrot.lane.b32.xlu2 %v1168_v8, %s1442_s2 }
 0x5c9   :  { %v1170_v0 = vpop.f32.mrf.mxu2 }
 0x5ca   :  { %v1171_v7 = vadd.f32 %v1170_v0, %v1114_v21 }
 0x5cc   :  { %1180 = vst.msk [vmem:[%s2191_s13 + $0x8] sm:$0xff] %vm129_vm0, %v1171_v7  ;;  %1189 = vrot.lane.b32.xlu1 %v1171_v7, %s1442_s2 }
 0x5d1   :  { %v1173_v24 = vpop.f32.mrf.mxu2 }
 0x5d2   :  { %v1174_v25 = vadd.f32 %v1173_v24, %v1119_v23 }
 0x5d4   :  { %1181 = vst.msk [vmem:[%s2191_s13 + $0x10] sm:$0xff] %vm129_vm0, %v1174_v25  ;;  %1191 = vrot.lane.b32.xlu0 %v1174_v25, %s1442_s2 }
 0x5d9   :  { %v1176_v4 = vpop.f32.mrf.mxu2 }
 0x5da   :  { %v1177_v27 = vadd.f32 %v1176_v4, %v1124_v2 }
 0x5dc   :  { %1182 = vst.msk [vmem:[%s2191_s13 + $0x18] sm:$0xff] %vm129_vm0, %v1177_v27  ;;  %1193 = vrot.lane.b32.xlu2 %v1177_v27, %s1442_s2 }
 0x61e   :  { %v1188_v30 = vpop.permute.xlu2 %1187 }
 0x61f   :  { %1295 = vst.msk [vmem:[%s2191_s13 + $0x20] sm:$0xff] %vm129_vm0, %v1188_v30 }
 0x636   :  { %v1194_v50 = vpop.permute.xlu2 %1193 }
 0x637   :  { %1298 = vst.msk [vmem:[%s2191_s13 + $0x38] sm:$0xff] %vm129_vm0, %v1194_v50 }
 0x63e   :  { %v1190_v37 = vpop.permute.xlu1 %1189 }
 0x63f   :  { %1296 = vst.msk [vmem:[%s2191_s13 + $0x28] sm:$0xff] %vm129_vm0, %v1190_v37 }
 0x646   :  { %v1192_v44 = vpop.permute.xlu0 %1191 }
 0x647   :  { %1297 = vst.msk [vmem:[%s2191_s13 + $0x30] sm:$0xff] %vm129_vm0, %v1192_v44 }
 0x648   :  { %1208 = vsyncpa [#allocation3], 1 }
 0x649   :  { %1209 = vsyncpa [#allocation5], 1 }
 0x64a   :  { %1210 = vsyncpa [#allocation8], 1 }

</bundles_post_ra>
